<compile_context>
chip_gen: v5e
topology: v5e:2x2
jax: 0.10.0
libtpu: 0.0.40
codegen_flags: <defaults>
</compile_context>

<pallas_src>
import math

import jax
import jax.numpy as jnp
from jax import lax
from jax.experimental import pallas as pl
from jax.experimental.pallas import tpu as pltpu

# ---------------- mini-BERT config ----------------
VOCAB = 100
TYPE_VOCAB = 2
MAX_POS = 32
HIDDEN = 128          # stands in for 768 (multiple of 128 -> lane dense)
NUM_HEADS = 2         # stands in for 12
HEAD_DIM = HIDDEN // NUM_HEADS
INTERMEDIATE = 256    # stands in for 3072
NUM_LAYERS = 2        # stands in for 12
NUM_CLASSES = 5
LN_EPS = 1e-12

BATCH = 2
SEQ = 8
BS = BATCH * SEQ


# ---------------- in-kernel helpers ----------------
def _layernorm(x, gamma, beta):
    mean = jnp.mean(x, axis=-1, keepdims=True)
    var = jnp.mean(jnp.square(x - mean), axis=-1, keepdims=True)
    return (x - mean) * lax.rsqrt(var + LN_EPS) * gamma + beta


def _erf(x):
    # Abramowitz & Stegun 7.1.26 rational approximation (|err| < 1.5e-7):
    # exact-GELU numerics (HF BertIntermediate uses erf-GELU, not the tanh approx).
    p = 0.3275911
    a1, a2, a3, a4, a5 = (0.254829592, -0.284496736, 1.421413741,
                          -1.453152027, 1.061405429)
    sgn = jnp.where(x >= 0.0, 1.0, -1.0)
    ax = jnp.abs(x)
    t = 1.0 / (1.0 + p * ax)
    poly = ((((a5 * t + a4) * t + a3) * t + a2) * t + a1) * t
    return sgn * (1.0 - poly * jnp.exp(-ax * ax))


def _gelu_exact(x):
    return 0.5 * x * (1.0 + _erf(x * (1.0 / math.sqrt(2.0))))


# ---------------- fused kernel: embedding LN + all encoder layers -----------------
# grid = (m, layer); one m-tile = one full sequence (attention never crosses M tiles).
# hid_ref (the output block, index (m, 0)) stays VMEM-resident across the serial
# layer axis and doubles as the per-M-tile activation carry.
def fused_encoder_kernel(
        emb_ref, amask_ref, embg_ref, embb_ref,
        wqkv_ref, bqkv_ref, wo_ref, bo_ref,
        ln1g_ref, ln1b_ref, w1_ref, b1_ref, w2_ref, b2_ref,
        ln2g_ref, ln2b_ref,
        hid_ref):
    layer = pl.program_id(1)

    # ---- prologue (layer 0 of this M tile): embedding LayerNorm -> resident state
    @pl.when(layer == 0)
    def _():
        hid_ref[...] = _layernorm(emb_ref[...], embg_ref[...], embb_ref[...])

    x = hid_ref[...]                               # (SEQ, HIDDEN) f32, VMEM-resident
    xb = x.astype(jnp.bfloat16)

    # ---- fused QKV projection: one wide MXU matmul, f32 accumulate, one cast ------
    qkv = (jnp.dot(xb, wqkv_ref[...], preferred_element_type=jnp.float32)
           + bqkv_ref[...]).astype(jnp.bfloat16)   # (SEQ, 3*HIDDEN)
    # lane-aligned 128-wide slices (q already pre-scaled by 1/sqrt(head_dim) on host)
    q = qkv[:, 0 * HIDDEN:1 * HIDDEN]
    k = qkv[:, 1 * HIDDEN:2 * HIDDEN]
    v = qkv[:, 2 * HIDDEN:3 * HIDDEN]

    # additive mask precomputed on host; broadcast once, outside the unrolled loop
    amask = jnp.broadcast_to(amask_ref[...], (SEQ, SEQ))          # (S, S) f32

    # ---- multi-head attention, attn_out accumulated directly (no 64-lane stores) --
    attn = jnp.zeros((SEQ, HIDDEN), jnp.float32)
    for h in range(NUM_HEADS):                     # static unroll, NUM_HEADS small
        lo = h * HEAD_DIM
        qh = q[:, lo:lo + HEAD_DIM]                # (S, HD) bf16
        kh = k[:, lo:lo + HEAD_DIM]
        vh = v[:, lo:lo + HEAD_DIM]
        # scores: contract last dims (trans_b matmul form, no explicit transpose)
        s = lax.dot_general(qh, kh, (((1,), (1,)), ((), ())),
                            preferred_element_type=jnp.float32)   # (S, S) f32
        s = s + amask
        s = s - jnp.max(s, axis=-1, keepdims=True)
        p = jnp.exp(s)
        p = p * pl.reciprocal(jnp.sum(p, axis=-1, keepdims=True), approx=True)
        ctx = jnp.dot(p.astype(jnp.bfloat16), vh,
                      preferred_element_type=jnp.float32)          # (S, HD)
        # fold the head straight into the output projection (lane-dense N=128)
        attn = attn + jnp.dot(ctx.astype(jnp.bfloat16),
                              wo_ref[lo:lo + HEAD_DIM, :],
                              preferred_element_type=jnp.float32)
    attn = attn + bo_ref[...]

    x1 = _layernorm(x + attn, ln1g_ref[...], ln1b_ref[...])

    # ---- feed forward (exact-erf GELU, f32 elementwise math) ----
    inter = _gelu_exact(jnp.dot(x1.astype(jnp.bfloat16), w1_ref[...],
                                preferred_element_type=jnp.float32) + b1_ref[...])
    ffn = jnp.dot(inter.astype(jnp.bfloat16), w2_ref[...],
                  preferred_element_type=jnp.float32) + b2_ref[...]
    hid_ref[...] = _layernorm(x1 + ffn, ln2g_ref[...], ln2b_ref[...])


# ---------------- parameter init (deterministic, synthetic) ----------------
def init_params(key):
    def nrm(k, shape, std=0.02):
        return jax.random.normal(k, shape, jnp.float32) * std

    ks = iter(jax.random.split(key, 16))
    L = NUM_LAYERS
    scale = 1.0 / math.sqrt(HEAD_DIM)

    # fused QKV: q slice of BOTH weight and bias pre-scaled by 1/sqrt(head_dim) so
    # the kernel never multiplies the (S, S) score tensor.
    wq = nrm(next(ks), (L, HIDDEN, HIDDEN)) * scale
    wk = nrm(next(ks), (L, HIDDEN, HIDDEN))
    wv = nrm(next(ks), (L, HIDDEN, HIDDEN))
    bq = jnp.zeros((L, 1, HIDDEN), jnp.float32) * scale
    bk = jnp.zeros((L, 1, HIDDEN), jnp.float32)
    bv = jnp.zeros((L, 1, HIDDEN), jnp.float32)

    return {
        # embeddings (gather stays in JAX glue)
        'word_emb': nrm(next(ks), (VOCAB, HIDDEN)),
        'pos_emb': nrm(next(ks), (MAX_POS, HIDDEN)),
        'type_emb': nrm(next(ks), (TYPE_VOCAB, HIDDEN)),
        'emb_ln_g': jnp.ones((1, HIDDEN), jnp.float32),
        'emb_ln_b': jnp.zeros((1, HIDDEN), jnp.float32),
        # stacked per-layer encoder weights: bf16 for the MXU, biases/LN params f32
        'wqkv': jnp.concatenate([wq, wk, wv], axis=-1).astype(jnp.bfloat16),
        'bqkv': jnp.concatenate([bq, bk, bv], axis=-1),
        'wo': nrm(next(ks), (L, HIDDEN, HIDDEN)).astype(jnp.bfloat16),
        'bo': jnp.zeros((L, 1, HIDDEN), jnp.float32),
        'ln1_g': jnp.ones((L, 1, HIDDEN), jnp.float32),
        'ln1_b': jnp.zeros((L, 1, HIDDEN), jnp.float32),
        'w1': nrm(next(ks), (L, HIDDEN, INTERMEDIATE)).astype(jnp.bfloat16),
        'b1': jnp.zeros((L, 1, INTERMEDIATE), jnp.float32),
        'w2': nrm(next(ks), (L, INTERMEDIATE, HIDDEN)).astype(jnp.bfloat16),
        'b2': jnp.zeros((L, 1, HIDDEN), jnp.float32),
        'ln2_g': jnp.ones((L, 1, HIDDEN), jnp.float32),
        'ln2_b': jnp.zeros((L, 1, HIDDEN), jnp.float32),
        # pooler + classifier run as plain XLA on the kernel's hidden-state output
        'pool_w': nrm(next(ks), (HIDDEN, HIDDEN)),
        'pool_b': jnp.zeros((HIDDEN,), jnp.float32),
        'cls_w': nrm(next(ks), (HIDDEN, NUM_CLASSES)),
        'cls_b': jnp.zeros((NUM_CLASSES,), jnp.float32),
    }


def _vmem_limit_bytes():
    # generation-aware VMEM cap: ~96 MiB on v5e/v6e (128 MiB physical),
    # ~48 MiB on v7x (64 MiB per TensorCore); conservative fallback if query fails.
    try:
        cap = int(pltpu.get_tpu_info().vmem_capacity_bytes)
    except Exception:
        cap = 64 * 1024 * 1024
    return min((cap * 3) // 4, 100 * 1024 * 1024)


# ---------------- full forward ----------------
def bert_classifier_forward(params, input_ids, mask):
    # embedding lookup (gather) + sum stays in plain JAX glue outside the kernel
    word = params['word_emb'][input_ids]                               # (B, S, H)
    pos = params['pos_emb'][jnp.arange(SEQ)][None, :, :]               # (1, S, H)
    typ = params['type_emb'][0][None, None, :]                         # token_type_ids = 0
    emb = (word + pos + typ).reshape(BS, HIDDEN)                       # (B*S, H)
    # BERT extended attention mask precomputed on host: (B, 1, S) additive f32
    add_mask = ((1.0 - mask.astype(jnp.float32)) * -10000.0)[:, None, :]

    layer3 = lambda d1, d2: pl.BlockSpec((None, d1, d2), lambda m, l: (l, 0, 0))
    const2 = lambda d1, d2: pl.BlockSpec((d1, d2), lambda m, l: (0, 0))

    grid_spec = pltpu.PrefetchScalarGridSpec(
        num_scalar_prefetch=0,
        grid=(BATCH, NUM_LAYERS),              # (M tiles: parallel, layers: serial)
        in_specs=[
            pl.BlockSpec((SEQ, HIDDEN), lambda m, l: (m, 0)),       # emb, per M tile
            pl.BlockSpec((None, 1, SEQ), lambda m, l: (m, 0, 0)),   # additive mask
            const2(1, HIDDEN),                                      # emb LN gamma
            const2(1, HIDDEN),                                      # emb LN beta
            layer3(HIDDEN, 3 * HIDDEN),                             # fused wqkv
            layer3(1, 3 * HIDDEN),                                  # fused bqkv
            layer3(HIDDEN, HIDDEN),                                 # wo
            layer3(1, HIDDEN),                                      # bo
            layer3(1, HIDDEN),                                      # ln1 gamma
            layer3(1, HIDDEN),                                      # ln1 beta
            layer3(HIDDEN, INTERMEDIATE),                           # w1
            layer3(1, INTERMEDIATE),                                # b1
            layer3(INTERMEDIATE, HIDDEN),                           # w2
            layer3(1, HIDDEN),                                      # b2
            layer3(1, HIDDEN),                                      # ln2 gamma
            layer3(1, HIDDEN),                                      # ln2 beta
        ],
        # hidden-state output block is resident across the serial layer axis and
        # carries the per-M-tile activation; lane-dense (8, 128) f32 blocks.
        out_specs=pl.BlockSpec((SEQ, HIDDEN), lambda m, l: (m, 0)),
    )

    hidden = pl.pallas_call(
        fused_encoder_kernel,
        out_shape=jax.ShapeDtypeStruct((BS, HIDDEN), jnp.float32),
        grid_spec=grid_spec,
        compiler_params=pltpu.CompilerParams(
            dimension_semantics=("parallel", "arbitrary"),
            vmem_limit_bytes=_vmem_limit_bytes()),
    )(emb, add_mask, params['emb_ln_g'], params['emb_ln_b'],
      params['wqkv'], params['bqkv'], params['wo'], params['bo'],
      params['ln1_g'], params['ln1_b'], params['w1'], params['b1'],
      params['w2'], params['b2'], params['ln2_g'], params['ln2_b'])

    # pooler + Dropout(0.5, eval -> identity) + Linear(768->5) + ReLU: trivially
    # small, runs as plain XLA so its weights are never held in VMEM per layer.
    cls = hidden.reshape(BATCH, SEQ, HIDDEN)[:, 0, :]                  # [CLS] rows
    pooled = jnp.tanh(cls @ params['pool_w'] + params['pool_b'])
    logits = pooled @ params['cls_w'] + params['cls_b']
    return jnp.maximum(logits, 0.0)                                    # ReLU, (B, 5)


if __name__ == "__main__":
    key = jax.random.PRNGKey(0)
    k_param, k_ids = jax.random.split(key)

    params = init_params(k_param)
    input_ids = jax.random.randint(k_ids, (BATCH, SEQ), 0, VOCAB, dtype=jnp.int32)
    # attention mask: second example has two padding positions
    mask = jnp.array([[1, 1, 1, 1, 1, 1, 1, 1],
                      [1, 1, 1, 1, 1, 1, 0, 0]], dtype=jnp.int32)

    out = jax.jit(bert_classifier_forward)(params, input_ids, mask)
    out = jax.block_until_ready(out)
    assert out.shape == (BATCH, NUM_CLASSES)
    assert bool(jnp.all(out >= 0.0))            # ReLU output
    assert bool(jnp.all(jnp.isfinite(out)))
    print("KERNEL_OK")
</pallas_src>

<mosaic_0001>
module attributes {stable_mosaic.version = 11 : i64} {
  func.func @fused_encoder_kernel(%arg0: i32, %arg1: i32, %arg2: memref<8x128xf32, #tpu.memory_space<vmem>>, %arg3: memref<1x1x8xf32, #tpu.memory_space<vmem>>, %arg4: memref<1x128xf32, #tpu.memory_space<vmem>>, %arg5: memref<1x128xf32, #tpu.memory_space<vmem>>, %arg6: memref<1x128x384xbf16, #tpu.memory_space<vmem>>, %arg7: memref<1x1x384xf32, #tpu.memory_space<vmem>>, %arg8: memref<1x128x128xbf16, #tpu.memory_space<vmem>>, %arg9: memref<1x1x128xf32, #tpu.memory_space<vmem>>, %arg10: memref<1x1x128xf32, #tpu.memory_space<vmem>>, %arg11: memref<1x1x128xf32, #tpu.memory_space<vmem>>, %arg12: memref<1x128x256xbf16, #tpu.memory_space<vmem>>, %arg13: memref<1x1x256xf32, #tpu.memory_space<vmem>>, %arg14: memref<1x256x128xbf16, #tpu.memory_space<vmem>>, %arg15: memref<1x1x128xf32, #tpu.memory_space<vmem>>, %arg16: memref<1x1x128xf32, #tpu.memory_space<vmem>>, %arg17: memref<1x1x128xf32, #tpu.memory_space<vmem>>, %arg18: memref<8x128xf32, #tpu.memory_space<vmem>>) attributes {dimension_semantics = [#tpu.dimension_semantics<parallel>, #tpu.dimension_semantics<arbitrary>], iteration_bounds = array<i64: 2, 2>, scalar_prefetch = 0 : i64, scratch_operands = 0 : i64, tpu.core_type = #tpu.core_type<tc>, window_params = [{transform_indices = @transform_0, window_bounds = array<i64: 8, 128>}, {transform_indices = @transform_1, window_bounds = array<i64: 1, 1, 8>}, {pipeline_mode = #tpu.pipeline_mode<synchronous>, transform_indices = @transform_2, window_bounds = array<i64: 1, 128>}, {pipeline_mode = #tpu.pipeline_mode<synchronous>, transform_indices = @transform_3, window_bounds = array<i64: 1, 128>}, {transform_indices = @transform_4, window_bounds = array<i64: 1, 128, 384>}, {transform_indices = @transform_5, window_bounds = array<i64: 1, 1, 384>}, {transform_indices = @transform_6, window_bounds = array<i64: 1, 128, 128>}, {transform_indices = @transform_7, window_bounds = array<i64: 1, 1, 128>}, {transform_indices = @transform_8, window_bounds = array<i64: 1, 1, 128>}, {transform_indices = @transform_9, window_bounds = array<i64: 1, 1, 128>}, {transform_indices = @transform_10, window_bounds = array<i64: 1, 128, 256>}, {transform_indices = @transform_11, window_bounds = array<i64: 1, 1, 256>}, {transform_indices = @transform_12, window_bounds = array<i64: 1, 256, 128>}, {transform_indices = @transform_13, window_bounds = array<i64: 1, 1, 128>}, {transform_indices = @transform_14, window_bounds = array<i64: 1, 1, 128>}, {transform_indices = @transform_15, window_bounds = array<i64: 1, 1, 128>}, {transform_indices = @transform_16, window_bounds = array<i64: 8, 128>}]} {
    %c0_i32 = arith.constant 0 : i32
    %0 = arith.cmpi eq, %arg1, %c0_i32 : i32
    %1 = arith.extui %0 : i1 to i32
    %c0_i32_0 = arith.constant 0 : i32
    %2 = arith.cmpi ne, %1, %c0_i32_0 : i32
    scf.if %2 {
      %c0_84 = arith.constant 0 : index
      %c0_85 = arith.constant 0 : index
      %181 = vector.load %arg2[%c0_84, %c0_85] : memref<8x128xf32, #tpu.memory_space<vmem>>, vector<8x128xf32>
      %c0_86 = arith.constant 0 : index
      %c0_87 = arith.constant 0 : index
      %182 = vector.load %arg4[%c0_86, %c0_87] : memref<1x128xf32, #tpu.memory_space<vmem>>, vector<1x128xf32>
      %c0_88 = arith.constant 0 : index
      %c0_89 = arith.constant 0 : index
      %183 = vector.load %arg5[%c0_88, %c0_89] : memref<1x128xf32, #tpu.memory_space<vmem>>, vector<1x128xf32>
      %cst_90 = arith.constant dense<0.000000e+00> : vector<8xf32>
      %184 = vector.multi_reduction <add>, %181, %cst_90 [1] : vector<8x128xf32> to vector<8xf32>
      %185 = vector.shape_cast %184 : vector<8xf32> to vector<8x1xf32>
      %cst_91 = arith.constant 1.280000e+02 : f32
      %186 = vector.broadcast %cst_91 : f32 to vector<8x1xf32>
      %187 = arith.divf %185, %186 : vector<8x1xf32>
      %188 = vector.broadcast %187 : vector<8x1xf32> to vector<8x128xf32>
      %189 = arith.subf %181, %188 : vector<8x128xf32>
      %190 = arith.mulf %189, %189 : vector<8x128xf32>
      %cst_92 = arith.constant dense<0.000000e+00> : vector<8xf32>
      %191 = vector.multi_reduction <add>, %190, %cst_92 [1] : vector<8x128xf32> to vector<8xf32>
      %192 = vector.shape_cast %191 : vector<8xf32> to vector<8x1xf32>
      %cst_93 = arith.constant 1.280000e+02 : f32
      %193 = vector.broadcast %cst_93 : f32 to vector<8x1xf32>
      %194 = arith.divf %192, %193 : vector<8x1xf32>
      %195 = vector.broadcast %187 : vector<8x1xf32> to vector<8x128xf32>
      %196 = arith.subf %181, %195 : vector<8x128xf32>
      %cst_94 = arith.constant 9.99999996E-13 : f32
      %197 = vector.broadcast %cst_94 : f32 to vector<8x1xf32>
      %198 = arith.addf %194, %197 : vector<8x1xf32>
      %199 = math.rsqrt %198 : vector<8x1xf32>
      %200 = vector.broadcast %199 : vector<8x1xf32> to vector<8x128xf32>
      %201 = arith.mulf %196, %200 : vector<8x128xf32>
      %202 = vector.broadcast %182 : vector<1x128xf32> to vector<8x128xf32>
      %203 = arith.mulf %201, %202 : vector<8x128xf32>
      %204 = vector.broadcast %183 : vector<1x128xf32> to vector<8x128xf32>
      %205 = arith.addf %203, %204 : vector<8x128xf32>
      %c0_95 = arith.constant 0 : index
      %c0_96 = arith.constant 0 : index
      %206 = vector.load %arg18[%c0_95, %c0_96] : memref<8x128xf32, #tpu.memory_space<vmem>>, vector<8x128xf32>
      tpu.vector_store %arg18[%c0_95, %c0_96], %205 {strides = array<i32>} : memref<8x128xf32, #tpu.memory_space<vmem>>, vector<8x128xf32>,
    } else {
    }
    %c0 = arith.constant 0 : index
    %c0_1 = arith.constant 0 : index
    %3 = vector.load %arg18[%c0, %c0_1] : memref<8x128xf32, #tpu.memory_space<vmem>>, vector<8x128xf32>
    %4 = arith.truncf %3 : vector<8x128xf32> to vector<8x128xbf16>
    %c0_2 = arith.constant 0 : index
    %c0_3 = arith.constant 0 : index
    %c0_4 = arith.constant 0 : index
    %5 = vector.load %arg6[%c0_2, %c0_3, %c0_4] : memref<1x128x384xbf16, #tpu.memory_space<vmem>>, vector<1x128x384xbf16>
    %6 = vector.shape_cast %5 : vector<1x128x384xbf16> to vector<128x384xbf16>
    %cst = arith.constant dense<0.000000e+00> : vector<8x384xf32>
    %7 = tpu.matmul %4, %6, %cst {dimension_numbers = #tpu.dot_dimension_numbers<[1], [0], [0], [1], [0, 0, 1, 1], [], []>} : vector<8x128xbf16>, vector<128x384xbf16>, vector<8x384xf32> -> vector<8x384xf32>
    %c0_5 = arith.constant 0 : index
    %c0_6 = arith.constant 0 : index
    %c0_7 = arith.constant 0 : index
    %8 = vector.load %arg7[%c0_5, %c0_6, %c0_7] : memref<1x1x384xf32, #tpu.memory_space<vmem>>, vector<1x1x384xf32>
    %9 = vector.shape_cast %8 : vector<1x1x384xf32> to vector<1x384xf32>
    %10 = vector.broadcast %9 : vector<1x384xf32> to vector<8x384xf32>
    %11 = arith.addf %7, %10 : vector<8x384xf32>
    %12 = arith.truncf %11 : vector<8x384xf32> to vector<8x384xbf16>
    %13 = vector.extract_strided_slice %12 {offsets = [0, 0], sizes = [8, 128], strides = [1, 1]} : vector<8x384xbf16> to vector<8x128xbf16>
    %14 = vector.extract_strided_slice %12 {offsets = [0, 128], sizes = [8, 128], strides = [1, 1]} : vector<8x384xbf16> to vector<8x128xbf16>
    %15 = vector.extract_strided_slice %12 {offsets = [0, 256], sizes = [8, 128], strides = [1, 1]} : vector<8x384xbf16> to vector<8x128xbf16>
    %c0_8 = arith.constant 0 : index
    %c0_9 = arith.constant 0 : index
    %c0_10 = arith.constant 0 : index
    %16 = vector.load %arg3[%c0_8, %c0_9, %c0_10] : memref<1x1x8xf32, #tpu.memory_space<vmem>>, vector<1x1x8xf32>
    %17 = vector.shape_cast %16 : vector<1x1x8xf32> to vector<1x8xf32>
    %18 = vector.shape_cast %17 : vector<1x8xf32> to vector<1x8xf32>
    %19 = vector.broadcast %18 : vector<1x8xf32> to vector<8x8xf32>
    %cst_11 = arith.constant 0.000000e+00 : f32
    %20 = vector.broadcast %cst_11 : f32 to vector<8x128xf32>
    %21 = vector.extract_strided_slice %13 {offsets = [0, 0], sizes = [8, 64], strides = [1, 1]} : vector<8x128xbf16> to vector<8x64xbf16>
    %22 = vector.extract_strided_slice %14 {offsets = [0, 0], sizes = [8, 64], strides = [1, 1]} : vector<8x128xbf16> to vector<8x64xbf16>
    %23 = vector.extract_strided_slice %15 {offsets = [0, 0], sizes = [8, 64], strides = [1, 1]} : vector<8x128xbf16> to vector<8x64xbf16>
    %cst_12 = arith.constant dense<0.000000e+00> : vector<8x8xf32>
    %24 = tpu.matmul %21, %22, %cst_12 {dimension_numbers = #tpu.dot_dimension_numbers<[1], [1], [0], [0], [0, 0, 1, 0], [], []>} : vector<8x64xbf16>, vector<8x64xbf16>, vector<8x8xf32> -> vector<8x8xf32>
    %25 = arith.addf %24, %19 : vector<8x8xf32>
    %cst_13 = arith.constant dense<0xFF800000> : vector<8xf32>
    %26 = vector.multi_reduction <maximumf>, %25, %cst_13 [1] : vector<8x8xf32> to vector<8xf32>
    %27 = vector.shape_cast %26 : vector<8xf32> to vector<8x1xf32>
    %28 = vector.broadcast %27 : vector<8x1xf32> to vector<8x8xf32>
    %29 = arith.subf %25, %28 : vector<8x8xf32>
    %30 = math.exp %29 : vector<8x8xf32>
    %cst_14 = arith.constant dense<0.000000e+00> : vector<8xf32>
    %31 = vector.multi_reduction <add>, %30, %cst_14 [1] : vector<8x8xf32> to vector<8xf32>
    %32 = vector.shape_cast %31 : vector<8xf32> to vector<8x1xf32>
    %33 = tpu.reciprocal %32 {approx = true} : vector<8x1xf32> -> vector<8x1xf32>
    %34 = vector.broadcast %33 : vector<8x1xf32> to vector<8x8xf32>
    %35 = arith.mulf %30, %34 : vector<8x8xf32>
    %36 = arith.truncf %35 : vector<8x8xf32> to vector<8x8xbf16>
    %cst_15 = arith.constant dense<0.000000e+00> : vector<8x64xf32>
    %37 = tpu.matmul %36, %23, %cst_15 {dimension_numbers = #tpu.dot_dimension_numbers<[1], [0], [0], [1], [0, 0, 1, 1], [], []>} : vector<8x8xbf16>, vector<8x64xbf16>, vector<8x64xf32> -> vector<8x64xf32>
    %38 = arith.truncf %37 : vector<8x64xf32> to vector<8x64xbf16>
    %c0_16 = arith.constant 0 : index
    %c0_17 = arith.constant 0 : index
    %c0_18 = arith.constant 0 : index
    %39 = vector.load %arg8[%c0_16, %c0_17, %c0_18] : memref<1x128x128xbf16, #tpu.memory_space<vmem>>, vector<1x64x128xbf16>
    %40 = vector.shape_cast %39 : vector<1x64x128xbf16> to vector<64x128xbf16>
    %cst_19 = arith.constant dense<0.000000e+00> : vector<8x128xf32>
    %41 = tpu.matmul %38, %40, %cst_19 {dimension_numbers = #tpu.dot_dimension_numbers<[1], [0], [0], [1], [0, 0, 1, 1], [], []>} : vector<8x64xbf16>, vector<64x128xbf16>, vector<8x128xf32> -> vector<8x128xf32>
    %42 = arith.addf %20, %41 : vector<8x128xf32>
    %43 = vector.extract_strided_slice %13 {offsets = [0, 64], sizes = [8, 64], strides = [1, 1]} : vector<8x128xbf16> to vector<8x64xbf16>
    %44 = vector.extract_strided_slice %14 {offsets = [0, 64], sizes = [8, 64], strides = [1, 1]} : vector<8x128xbf16> to vector<8x64xbf16>
    %45 = vector.extract_strided_slice %15 {offsets = [0, 64], sizes = [8, 64], strides = [1, 1]} : vector<8x128xbf16> to vector<8x64xbf16>
    %cst_20 = arith.constant dense<0.000000e+00> : vector<8x8xf32>
    %46 = tpu.matmul %43, %44, %cst_20 {dimension_numbers = #tpu.dot_dimension_numbers<[1], [1], [0], [0], [0, 0, 1, 0], [], []>} : vector<8x64xbf16>, vector<8x64xbf16>, vector<8x8xf32> -> vector<8x8xf32>
    %47 = arith.addf %46, %19 : vector<8x8xf32>
    %cst_21 = arith.constant dense<0xFF800000> : vector<8xf32>
    %48 = vector.multi_reduction <maximumf>, %47, %cst_21 [1] : vector<8x8xf32> to vector<8xf32>
    %49 = vector.shape_cast %48 : vector<8xf32> to vector<8x1xf32>
    %50 = vector.broadcast %49 : vector<8x1xf32> to vector<8x8xf32>
    %51 = arith.subf %47, %50 : vector<8x8xf32>
    %52 = math.exp %51 : vector<8x8xf32>
    %cst_22 = arith.constant dense<0.000000e+00> : vector<8xf32>
    %53 = vector.multi_reduction <add>, %52, %cst_22 [1] : vector<8x8xf32> to vector<8xf32>
    %54 = vector.shape_cast %53 : vector<8xf32> to vector<8x1xf32>
    %55 = tpu.reciprocal %54 {approx = true} : vector<8x1xf32> -> vector<8x1xf32>
    %56 = vector.broadcast %55 : vector<8x1xf32> to vector<8x8xf32>
    %57 = arith.mulf %52, %56 : vector<8x8xf32>
    %58 = arith.truncf %57 : vector<8x8xf32> to vector<8x8xbf16>
    %cst_23 = arith.constant dense<0.000000e+00> : vector<8x64xf32>
    %59 = tpu.matmul %58, %45, %cst_23 {dimension_numbers = #tpu.dot_dimension_numbers<[1], [0], [0], [1], [0, 0, 1, 1], [], []>} : vector<8x8xbf16>, vector<8x64xbf16>, vector<8x64xf32> -> vector<8x64xf32>
    %60 = arith.truncf %59 : vector<8x64xf32> to vector<8x64xbf16>
    %c0_24 = arith.constant 0 : index
    %c64 = arith.constant 64 : index
    %c0_25 = arith.constant 0 : index
    %61 = vector.load %arg8[%c0_24, %c64, %c0_25] : memref<1x128x128xbf16, #tpu.memory_space<vmem>>, vector<1x64x128xbf16>
    %62 = vector.shape_cast %61 : vector<1x64x128xbf16> to vector<64x128xbf16>
    %cst_26 = arith.constant dense<0.000000e+00> : vector<8x128xf32>
    %63 = tpu.matmul %60, %62, %cst_26 {dimension_numbers = #tpu.dot_dimension_numbers<[1], [0], [0], [1], [0, 0, 1, 1], [], []>} : vector<8x64xbf16>, vector<64x128xbf16>, vector<8x128xf32> -> vector<8x128xf32>
    %64 = arith.addf %42, %63 : vector<8x128xf32>
    %c0_27 = arith.constant 0 : index
    %c0_28 = arith.constant 0 : index
    %c0_29 = arith.constant 0 : index
    %65 = vector.load %arg9[%c0_27, %c0_28, %c0_29] : memref<1x1x128xf32, #tpu.memory_space<vmem>>, vector<1x1x128xf32>
    %66 = vector.shape_cast %65 : vector<1x1x128xf32> to vector<1x128xf32>
    %67 = vector.broadcast %66 : vector<1x128xf32> to vector<8x128xf32>
    %68 = arith.addf %64, %67 : vector<8x128xf32>
    %69 = arith.addf %3, %68 : vector<8x128xf32>
    %c0_30 = arith.constant 0 : index
    %c0_31 = arith.constant 0 : index
    %c0_32 = arith.constant 0 : index
    %70 = vector.load %arg10[%c0_30, %c0_31, %c0_32] : memref<1x1x128xf32, #tpu.memory_space<vmem>>, vector<1x1x128xf32>
    %71 = vector.shape_cast %70 : vector<1x1x128xf32> to vector<1x128xf32>
    %c0_33 = arith.constant 0 : index
    %c0_34 = arith.constant 0 : index
    %c0_35 = arith.constant 0 : index
    %72 = vector.load %arg11[%c0_33, %c0_34, %c0_35] : memref<1x1x128xf32, #tpu.memory_space<vmem>>, vector<1x1x128xf32>
    %73 = vector.shape_cast %72 : vector<1x1x128xf32> to vector<1x128xf32>
    %cst_36 = arith.constant dense<0.000000e+00> : vector<8xf32>
    %74 = vector.multi_reduction <add>, %69, %cst_36 [1] : vector<8x128xf32> to vector<8xf32>
    %75 = vector.shape_cast %74 : vector<8xf32> to vector<8x1xf32>
    %cst_37 = arith.constant 1.280000e+02 : f32
    %76 = vector.broadcast %cst_37 : f32 to vector<8x1xf32>
    %77 = arith.divf %75, %76 : vector<8x1xf32>
    %78 = vector.broadcast %77 : vector<8x1xf32> to vector<8x128xf32>
    %79 = arith.subf %69, %78 : vector<8x128xf32>
    %80 = arith.mulf %79, %79 : vector<8x128xf32>
    %cst_38 = arith.constant dense<0.000000e+00> : vector<8xf32>
    %81 = vector.multi_reduction <add>, %80, %cst_38 [1] : vector<8x128xf32> to vector<8xf32>
    %82 = vector.shape_cast %81 : vector<8xf32> to vector<8x1xf32>
    %cst_39 = arith.constant 1.280000e+02 : f32
    %83 = vector.broadcast %cst_39 : f32 to vector<8x1xf32>
    %84 = arith.divf %82, %83 : vector<8x1xf32>
    %85 = vector.broadcast %77 : vector<8x1xf32> to vector<8x128xf32>
    %86 = arith.subf %69, %85 : vector<8x128xf32>
    %cst_40 = arith.constant 9.99999996E-13 : f32
    %87 = vector.broadcast %cst_40 : f32 to vector<8x1xf32>
    %88 = arith.addf %84, %87 : vector<8x1xf32>
    %89 = math.rsqrt %88 : vector<8x1xf32>
    %90 = vector.broadcast %89 : vector<8x1xf32> to vector<8x128xf32>
    %91 = arith.mulf %86, %90 : vector<8x128xf32>
    %92 = vector.broadcast %71 : vector<1x128xf32> to vector<8x128xf32>
    %93 = arith.mulf %91, %92 : vector<8x128xf32>
    %94 = vector.broadcast %73 : vector<1x128xf32> to vector<8x128xf32>
    %95 = arith.addf %93, %94 : vector<8x128xf32>
    %96 = arith.truncf %95 : vector<8x128xf32> to vector<8x128xbf16>
    %c0_41 = arith.constant 0 : index
    %c0_42 = arith.constant 0 : index
    %c0_43 = arith.constant 0 : index
    %97 = vector.load %arg12[%c0_41, %c0_42, %c0_43] : memref<1x128x256xbf16, #tpu.memory_space<vmem>>, vector<1x128x256xbf16>
    %98 = vector.shape_cast %97 : vector<1x128x256xbf16> to vector<128x256xbf16>
    %cst_44 = arith.constant dense<0.000000e+00> : vector<8x256xf32>
    %99 = tpu.matmul %96, %98, %cst_44 {dimension_numbers = #tpu.dot_dimension_numbers<[1], [0], [0], [1], [0, 0, 1, 1], [], []>} : vector<8x128xbf16>, vector<128x256xbf16>, vector<8x256xf32> -> vector<8x256xf32>
    %c0_45 = arith.constant 0 : index
    %c0_46 = arith.constant 0 : index
    %c0_47 = arith.constant 0 : index
    %100 = vector.load %arg13[%c0_45, %c0_46, %c0_47] : memref<1x1x256xf32, #tpu.memory_space<vmem>>, vector<1x1x256xf32>
    %101 = vector.shape_cast %100 : vector<1x1x256xf32> to vector<1x256xf32>
    %102 = vector.broadcast %101 : vector<1x256xf32> to vector<8x256xf32>
    %103 = arith.addf %99, %102 : vector<8x256xf32>
    %cst_48 = arith.constant 5.000000e-01 : f32
    %104 = vector.broadcast %cst_48 : f32 to vector<8x256xf32>
    %105 = arith.mulf %104, %103 : vector<8x256xf32>
    %cst_49 = arith.constant 0.707106769 : f32
    %106 = vector.broadcast %cst_49 : f32 to vector<8x256xf32>
    %107 = arith.mulf %103, %106 : vector<8x256xf32>
    %cst_50 = arith.constant 0.000000e+00 : f32
    %108 = vector.broadcast %cst_50 : f32 to vector<8x256xf32>
    %109 = arith.cmpf oge, %107, %108 : vector<8x256xf32>
    %cst_51 = arith.constant 1.000000e+00 : f32
    %cst_52 = arith.constant -1.000000e+00 : f32
    %110 = vector.broadcast %cst_51 : f32 to vector<8x256xf32>
    %111 = vector.broadcast %cst_52 : f32 to vector<8x256xf32>
    %112 = arith.select %109, %110, %111 : vector<8x256xi1>, vector<8x256xf32>
    %113 = math.absf %107 : vector<8x256xf32>
    %cst_53 = arith.constant 0.327591091 : f32
    %114 = vector.broadcast %cst_53 : f32 to vector<8x256xf32>
    %115 = arith.mulf %114, %113 : vector<8x256xf32>
    %cst_54 = arith.constant 1.000000e+00 : f32
    %116 = vector.broadcast %cst_54 : f32 to vector<8x256xf32>
    %117 = arith.addf %116, %115 : vector<8x256xf32>
    %cst_55 = arith.constant 1.000000e+00 : f32
    %118 = vector.broadcast %cst_55 : f32 to vector<8x256xf32>
    %119 = arith.divf %118, %117 : vector<8x256xf32>
    %cst_56 = arith.constant 1.06140542 : f32
    %120 = vector.broadcast %cst_56 : f32 to vector<8x256xf32>
    %121 = arith.mulf %120, %119 : vector<8x256xf32>
    %cst_57 = arith.constant -1.45315206 : f32
    %122 = vector.broadcast %cst_57 : f32 to vector<8x256xf32>
    %123 = arith.addf %121, %122 : vector<8x256xf32>
    %124 = arith.mulf %123, %119 : vector<8x256xf32>
    %cst_58 = arith.constant 1.42141378 : f32
    %125 = vector.broadcast %cst_58 : f32 to vector<8x256xf32>
    %126 = arith.addf %124, %125 : vector<8x256xf32>
    %127 = arith.mulf %126, %119 : vector<8x256xf32>
    %cst_59 = arith.constant -0.284496725 : f32
    %128 = vector.broadcast %cst_59 : f32 to vector<8x256xf32>
    %129 = arith.addf %127, %128 : vector<8x256xf32>
    %130 = arith.mulf %129, %119 : vector<8x256xf32>
    %cst_60 = arith.constant 0.254829586 : f32
    %131 = vector.broadcast %cst_60 : f32 to vector<8x256xf32>
    %132 = arith.addf %130, %131 : vector<8x256xf32>
    %133 = arith.mulf %132, %119 : vector<8x256xf32>
    %cst_61 = arith.constant 0.000000e+00 : f32
    %134 = vector.broadcast %cst_61 : f32 to vector<8x256xf32>
    %135 = arith.subf %134, %113 : vector<8x256xf32>
    %136 = arith.mulf %135, %113 : vector<8x256xf32>
    %137 = math.exp %136 : vector<8x256xf32>
    %138 = arith.mulf %133, %137 : vector<8x256xf32>
    %cst_62 = arith.constant 1.000000e+00 : f32
    %139 = vector.broadcast %cst_62 : f32 to vector<8x256xf32>
    %140 = arith.subf %139, %138 : vector<8x256xf32>
    %141 = arith.mulf %112, %140 : vector<8x256xf32>
    %cst_63 = arith.constant 1.000000e+00 : f32
    %142 = vector.broadcast %cst_63 : f32 to vector<8x256xf32>
    %143 = arith.addf %142, %141 : vector<8x256xf32>
    %144 = arith.mulf %105, %143 : vector<8x256xf32>
    %145 = arith.truncf %144 : vector<8x256xf32> to vector<8x256xbf16>
    %c0_64 = arith.constant 0 : index
    %c0_65 = arith.constant 0 : index
    %c0_66 = arith.constant 0 : index
    %146 = vector.load %arg14[%c0_64, %c0_65, %c0_66] : memref<1x256x128xbf16, #tpu.memory_space<vmem>>, vector<1x256x128xbf16>
    %147 = vector.shape_cast %146 : vector<1x256x128xbf16> to vector<256x128xbf16>
    %cst_67 = arith.constant dense<0.000000e+00> : vector<8x128xf32>
    %148 = tpu.matmul %145, %147, %cst_67 {dimension_numbers = #tpu.dot_dimension_numbers<[1], [0], [0], [1], [0, 0, 1, 1], [], []>} : vector<8x256xbf16>, vector<256x128xbf16>, vector<8x128xf32> -> vector<8x128xf32>
    %c0_68 = arith.constant 0 : index
    %c0_69 = arith.constant 0 : index
    %c0_70 = arith.constant 0 : index
    %149 = vector.load %arg15[%c0_68, %c0_69, %c0_70] : memref<1x1x128xf32, #tpu.memory_space<vmem>>, vector<1x1x128xf32>
    %150 = vector.shape_cast %149 : vector<1x1x128xf32> to vector<1x128xf32>
    %151 = vector.broadcast %150 : vector<1x128xf32> to vector<8x128xf32>
    %152 = arith.addf %148, %151 : vector<8x128xf32>
    %153 = arith.addf %95, %152 : vector<8x128xf32>
    %c0_71 = arith.constant 0 : index
    %c0_72 = arith.constant 0 : index
    %c0_73 = arith.constant 0 : index
    %154 = vector.load %arg16[%c0_71, %c0_72, %c0_73] : memref<1x1x128xf32, #tpu.memory_space<vmem>>, vector<1x1x128xf32>
    %155 = vector.shape_cast %154 : vector<1x1x128xf32> to vector<1x128xf32>
    %c0_74 = arith.constant 0 : index
    %c0_75 = arith.constant 0 : index
    %c0_76 = arith.constant 0 : index
    %156 = vector.load %arg17[%c0_74, %c0_75, %c0_76] : memref<1x1x128xf32, #tpu.memory_space<vmem>>, vector<1x1x128xf32>
    %157 = vector.shape_cast %156 : vector<1x1x128xf32> to vector<1x128xf32>
    %cst_77 = arith.constant dense<0.000000e+00> : vector<8xf32>
    %158 = vector.multi_reduction <add>, %153, %cst_77 [1] : vector<8x128xf32> to vector<8xf32>
    %159 = vector.shape_cast %158 : vector<8xf32> to vector<8x1xf32>
    %cst_78 = arith.constant 1.280000e+02 : f32
    %160 = vector.broadcast %cst_78 : f32 to vector<8x1xf32>
    %161 = arith.divf %159, %160 : vector<8x1xf32>
    %162 = vector.broadcast %161 : vector<8x1xf32> to vector<8x128xf32>
    %163 = arith.subf %153, %162 : vector<8x128xf32>
    %164 = arith.mulf %163, %163 : vector<8x128xf32>
    %cst_79 = arith.constant dense<0.000000e+00> : vector<8xf32>
    %165 = vector.multi_reduction <add>, %164, %cst_79 [1] : vector<8x128xf32> to vector<8xf32>
    %166 = vector.shape_cast %165 : vector<8xf32> to vector<8x1xf32>
    %cst_80 = arith.constant 1.280000e+02 : f32
    %167 = vector.broadcast %cst_80 : f32 to vector<8x1xf32>
    %168 = arith.divf %166, %167 : vector<8x1xf32>
    %169 = vector.broadcast %161 : vector<8x1xf32> to vector<8x128xf32>
    %170 = arith.subf %153, %169 : vector<8x128xf32>
    %cst_81 = arith.constant 9.99999996E-13 : f32
    %171 = vector.broadcast %cst_81 : f32 to vector<8x1xf32>
    %172 = arith.addf %168, %171 : vector<8x1xf32>
    %173 = math.rsqrt %172 : vector<8x1xf32>
    %174 = vector.broadcast %173 : vector<8x1xf32> to vector<8x128xf32>
    %175 = arith.mulf %170, %174 : vector<8x128xf32>
    %176 = vector.broadcast %155 : vector<1x128xf32> to vector<8x128xf32>
    %177 = arith.mulf %175, %176 : vector<8x128xf32>
    %178 = vector.broadcast %157 : vector<1x128xf32> to vector<8x128xf32>
    %179 = arith.addf %177, %178 : vector<8x128xf32>
    %c0_82 = arith.constant 0 : index
    %c0_83 = arith.constant 0 : index
    %180 = vector.load %arg18[%c0_82, %c0_83] : memref<8x128xf32, #tpu.memory_space<vmem>>, vector<8x128xf32>
    tpu.vector_store %arg18[%c0_82, %c0_83], %179 {strides = array<i32>} : memref<8x128xf32, #tpu.memory_space<vmem>>, vector<8x128xf32>,
    return
  }
  func.func @transform_0(%arg0: i32, %arg1: i32) -> (i32, i32) {
    %c0_i32 = arith.constant 0 : i32
    %c0_i32_0 = arith.constant 0 : i32
    return %arg0, %c0_i32 : i32, i32
  }
  func.func @transform_1(%arg0: i32, %arg1: i32) -> (i32, i32, i32) {
    %c0_i32 = arith.constant 0 : i32
    %c0_i32_0 = arith.constant 0 : i32
    %c0_i32_1 = arith.constant 0 : i32
    return %arg0, %c0_i32, %c0_i32_0 : i32, i32, i32
  }
  func.func @transform_2(%arg0: i32, %arg1: i32) -> (i32, i32) {
    %c0_i32 = arith.constant 0 : i32
    %c0_i32_0 = arith.constant 0 : i32
    %c0_i32_1 = arith.constant 0 : i32
    return %c0_i32, %c0_i32_0 : i32, i32
  }
  func.func @transform_3(%arg0: i32, %arg1: i32) -> (i32, i32) {
    %c0_i32 = arith.constant 0 : i32
    %c0_i32_0 = arith.constant 0 : i32
    %c0_i32_1 = arith.constant 0 : i32
    return %c0_i32, %c0_i32_0 : i32, i32
  }
  func.func @transform_4(%arg0: i32, %arg1: i32) -> (i32, i32, i32) {
    %c0_i32 = arith.constant 0 : i32
    %c0_i32_0 = arith.constant 0 : i32
    %c0_i32_1 = arith.constant 0 : i32
    return %arg1, %c0_i32, %c0_i32_0 : i32, i32, i32
  }
  func.func @transform_5(%arg0: i32, %arg1: i32) -> (i32, i32, i32) {
    %c0_i32 = arith.constant 0 : i32
    %c0_i32_0 = arith.constant 0 : i32
    %c0_i32_1 = arith.constant 0 : i32
    return %arg1, %c0_i32, %c0_i32_0 : i32, i32, i32
  }
  func.func @transform_6(%arg0: i32, %arg1: i32) -> (i32, i32, i32) {
    %c0_i32 = arith.constant 0 : i32
    %c0_i32_0 = arith.constant 0 : i32
    %c0_i32_1 = arith.constant 0 : i32
    return %arg1, %c0_i32, %c0_i32_0 : i32, i32, i32
  }
  func.func @transform_7(%arg0: i32, %arg1: i32) -> (i32, i32, i32) {
    %c0_i32 = arith.constant 0 : i32
    %c0_i32_0 = arith.constant 0 : i32
    %c0_i32_1 = arith.constant 0 : i32
    return %arg1, %c0_i32, %c0_i32_0 : i32, i32, i32
  }
  func.func @transform_8(%arg0: i32, %arg1: i32) -> (i32, i32, i32) {
    %c0_i32 = arith.constant 0 : i32
    %c0_i32_0 = arith.constant 0 : i32
    %c0_i32_1 = arith.constant 0 : i32
    return %arg1, %c0_i32, %c0_i32_0 : i32, i32, i32
  }
  func.func @transform_9(%arg0: i32, %arg1: i32) -> (i32, i32, i32) {
    %c0_i32 = arith.constant 0 : i32
    %c0_i32_0 = arith.constant 0 : i32
    %c0_i32_1 = arith.constant 0 : i32
    return %arg1, %c0_i32, %c0_i32_0 : i32, i32, i32
  }
  func.func @transform_10(%arg0: i32, %arg1: i32) -> (i32, i32, i32) {
    %c0_i32 = arith.constant 0 : i32
    %c0_i32_0 = arith.constant 0 : i32
    %c0_i32_1 = arith.constant 0 : i32
    return %arg1, %c0_i32, %c0_i32_0 : i32, i32, i32
  }
  func.func @transform_11(%arg0: i32, %arg1: i32) -> (i32, i32, i32) {
    %c0_i32 = arith.constant 0 : i32
    %c0_i32_0 = arith.constant 0 : i32
    %c0_i32_1 = arith.constant 0 : i32
    return %arg1, %c0_i32, %c0_i32_0 : i32, i32, i32
  }
  func.func @transform_12(%arg0: i32, %arg1: i32) -> (i32, i32, i32) {
    %c0_i32 = arith.constant 0 : i32
    %c0_i32_0 = arith.constant 0 : i32
    %c0_i32_1 = arith.constant 0 : i32
    return %arg1, %c0_i32, %c0_i32_0 : i32, i32, i32
  }
  func.func @transform_13(%arg0: i32, %arg1: i32) -> (i32, i32, i32) {
    %c0_i32 = arith.constant 0 : i32
    %c0_i32_0 = arith.constant 0 : i32
    %c0_i32_1 = arith.constant 0 : i32
    return %arg1, %c0_i32, %c0_i32_0 : i32, i32, i32
  }
  func.func @transform_14(%arg0: i32, %arg1: i32) -> (i32, i32, i32) {
    %c0_i32 = arith.constant 0 : i32
    %c0_i32_0 = arith.constant 0 : i32
    %c0_i32_1 = arith.constant 0 : i32
    return %arg1, %c0_i32, %c0_i32_0 : i32, i32, i32
  }
  func.func @transform_15(%arg0: i32, %arg1: i32) -> (i32, i32, i32) {
    %c0_i32 = arith.constant 0 : i32
    %c0_i32_0 = arith.constant 0 : i32
    %c0_i32_1 = arith.constant 0 : i32
    return %arg1, %c0_i32, %c0_i32_0 : i32, i32, i32
  }
  func.func @transform_16(%arg0: i32, %arg1: i32) -> (i32, i32) {
    %c0_i32 = arith.constant 0 : i32
    %c0_i32_0 = arith.constant 0 : i32
    return %arg0, %c0_i32 : i32, i32
  }
}

</mosaic_0001>

<bundles_post_ra>
// kernel: bert_classifier_forward.1
= control target key start
LH: loop header
LB: loop body
LE: loop exit
PB: predicated region body
PF: predicated region fallthrough
CT: control target
= control target key end

     0   :  { %s3107_s0 = inlined_call_operand.vmem [shape: f32[16,128], index: 0, kind: input, shape index: {}]   ;;  %s3108_s1 = inlined_call_operand.vmem [shape: f32[2,1,8], index: 1, kind: input, shape index: {}]   ;;  %s3109_s2 = inlined_call_operand.vmem [shape: f32[1,128], index: 2, kind: input, shape index: {}]   ;;  %s3110_s3 = inlined_call_operand.vmem [shape: f32[1,128], index: 3, kind: input, shape index: {}]   ;;  %s3111_s4 = inlined_call_operand.hbm [shape: bf16[2,128,384], index: 4, kind: input, shape index: {}]   ;;  %s3112_s5 = inlined_call_operand.vmem [shape: f32[2,1,384], index: 5, kind: input, shape index: {}]   ;;  %s3113_s6 = inlined_call_operand.vmem [shape: bf16[2,128,128], index: 6, kind: input, shape index: {}]   ;;  %s3114_s7 = inlined_call_operand.vmem [shape: f32[2,1,128], index: 7, kind: input, shape index: {}]   ;;  %s3115_s8 = inlined_call_operand.vmem [shape: f32[2,1,128], index: 8, kind: input, shape index: {}]   ;;  %s3116_s9 = inlined_call_operand.vmem [shape: f32[2,1,128], index: 9, kind: input, shape index: {}]   ;;  %s3117_s10 = inlined_call_operand.hbm [shape: bf16[2,128,256], index: 10, kind: input, shape index: {}]   ;;  %s3118_s11 = inlined_call_operand.vmem [shape: f32[2,1,256], index: 11, kind: input, shape index: {}]   ;;  %s3119_s12 = inlined_call_operand.hbm [shape: bf16[2,256,128], index: 12, kind: input, shape index: {}]   ;;  %s3120_s13 = inlined_call_operand.vmem [shape: f32[2,1,128], index: 13, kind: input, shape index: {}]   ;;  %s3121_s14 = inlined_call_operand.vmem [shape: f32[2,1,128], index: 14, kind: input, shape index: {}]   ;;  %s3122_s15 = inlined_call_operand.vmem [shape: f32[2,1,128], index: 15, kind: input, shape index: {}]   ;;  %s3123_s16 = inlined_call_operand.vmem [shape: f32[16,128], index: 16, kind: output, shape index: {}]  }
   0x1   :  { %3132 = sst [smem:[#allocation18_spill]] %s3107_s0 }
   0x2   :  { %3133 = sst [smem:[#allocation19_spill]] %s3109_s2 }
   0x3   :  { %3134 = sst [smem:[#allocation20_spill]] %s3110_s3 }
   0x4   :  { %3135 = sst [smem:[#allocation21_spill]] %s3111_s4 }
   0x5   :  { %3136 = sst [smem:[#allocation22_spill]] %s3112_s5 }
   0x6   :  { %3137 = sst [smem:[#allocation23_spill]] %s3113_s6 }
   0x7   :  { %3138 = sst [smem:[#allocation24_spill]] %s3114_s7 }
   0x8   :  { %3139 = sst [smem:[#allocation25_spill]] %s3115_s8 }
   0x9   :  { %3140 = sst [smem:[#allocation26_spill]] %s3116_s9 }
   0xa   :  { %3141 = sst [smem:[#allocation27_spill]] %s3117_s10 }
   0xb   :  { %3142 = sst [smem:[#allocation28_spill]] %s3118_s11 }
   0xc   :  { %3143 = sst [smem:[#allocation29_spill]] %s3119_s12 }
   0xd   :  { %3144 = sst [smem:[#allocation30_spill]] %s3120_s13 }
   0xe   :  { %3145 = sst [smem:[#allocation31_spill]] %s3121_s14 }
   0xf   :  { %3146 = sst [smem:[#allocation32_spill]] %s3122_s15 }
  0x10   :  { %3147 = sst [smem:[#allocation33_spill]] %s3123_s16 }
  0x11   :  { %21 = vsyncpa [#allocation3], 0 }
  0x12   :  { %23 = vsyncpa [#allocation3 + $0x1], 0 }
  0x13   :  { %24 = vsyncpa [#allocation5], 0 }
  0x14   :  { %26 = vsyncpa [#allocation5 + $0x1], 0  ;;  %s2690_s21 = smov 0   ;;  %s2692_s22 = smov 0  }
  0x15   :  { %s2694_s23 = smov 0   ;;  %s2696_s24 = smov 0  }
  0x16   :  { %s2698_s25 = smov 0   ;;  %s2700_s26 = smov 0  }
  0x17   :  { %s2702_s27 = smov 0   ;;  %s2704_s28 = smov 0  }
  0x18 LB: > { %3148 = sst [smem:[#allocation9_spill]] %s2569_s22  ;;  %s3126_s29 = sadd.s32 4294967295, %s2593_s28   ;;  %s2593_s28 = sphi %s2704_s28, %s32_s28   ;;  %s2589_s27 = sphi %s2702_s27, %s3195_s27   ;;  %s2585_s26 = sphi %s2700_s26, %s3194_s26   ;;  %s2581_s25 = sphi %s2698_s25, %s3193_s25   ;;  %s2577_s24 = sphi %s2696_s24, %s3192_s24   ;;  %s2573_s23 = sphi %s2694_s23, %s3191_s23   ;;  %s2569_s22 = sphi %s2692_s22, %s3190_s22   ;;  %s2565_s21 = sphi %s2690_s21, %s3189_s21  }
  0x19   : > { %3149 = sst [smem:[#allocation10_spill]] %s2573_s23  ;;  %s41_s30 = sadd.s32 1, %s2585_s26 }
  0x1a   : > { %3150 = sst [smem:[#allocation11_spill]] %s2585_s26  ;;  %p42_p0 = scmp.ge.s32.totalorder %s41_s30, 2 }
  0x1b   : > { %3151 = sst [smem:[#allocation12_spill]] %s2589_s27  ;;  %s44_s0 = sadd.s32 1, %s2589_s27 }
  0x1c   : > { %3152 = sst [smem:[#allocation13_spill]] %s2593_s28  ;;  %s145_s17 = sadd.s32 1, %s2573_s23 }
  0x1d   : > { %p152_p1 = scmp.ne.s32.totalorder %s2573_s23, %s2569_s22  ;;  %s3197_s30 = smov (%p42_p0, %s41_s30), 0 }
  0x1e   : > { %3153 = sst [smem:[#allocation14_spill]] %s3197_s30  ;;  %s3199_s0 = smov (!%p42_p0, %s44_s0), %s2589_s27 }
  0x1f   : > { %s142_s18 = ssub.s32 %s2585_s26, %s3197_s30  ;;  %p153_p2 = scmp.eq.s32.totalorder %s2593_s28, 0 }
  0x20   : > { %p46_p3 = scmp.ge.s32.totalorder %s3199_s0, 2  ;;  %p143_p4 = scmp.eq.s32.totalorder %s142_s18, 0 }
  0x21   : > { %p154_p5 = por %p153_p2, %p152_p1  ;;  %p158_p6 = scmp.ne.s32.totalorder %s2569_s22, %s2565_s21 }
  0x22   : > { %s3201_s0 = smov (%p46_p3, %s3199_s0), 0  ;;  %p159_p7 = scmp.eq.s32.totalorder %s3126_s29, 0 }
  0x23   : > { %3154 = sst [smem:[#allocation15_spill]] %s3201_s0  ;;  %p2323_p8 = scmp.lt.s32.totalorder %s2593_s28, 4 }
  0x24   : > { %s2744_s19 = scalar_select %p143_p4, %s2573_s23, %s145_s17  }
  0x25   : > { %s2750_s20 = sand.u32 1, %s2573_s23   ;;  %p2752_p9 = por %p159_p7, %p158_p6 }
  0x26   : > { %3155 = sst [smem:[#allocation16_spill]] %s2744_s19  ;;  %s568_s30 = sand.u32 1, %s2593_s28  }
  0x27   : > { %p2757_p10 = pnand %p2323_p8, %p154_p5  ;;  %s1957_s21 = sshll.u32 %s2750_s20, 7 }
  0x28   : > { %s2236_s18 = sshll.u32 %s2585_s26, 7  ;;  %s3158_s10 = sld [smem:[#allocation27_spill]] }
  0x29   : > { %s572_s19 = scalar_lea.vmem [#allocation4], %s1957_s21  ;;  %s2766_s16 = scalar_lea.sflag [#allocation5], %s568_s30 }
  0x2a   : > { %s580_s23 = sshll.u32 %s572_s19, 4  ;;  %s2595_s15 = smov 128   ;;  %s581_s23 = int_to_ptr.vmem [resolvable:$true] %s580_s23 }
  0x2b   : > { %s2596_s14 = smov 8   ;;  %s3159_s12 = sld [smem:[#allocation29_spill]] }
  0x2c   : > { %s601_s17 = scalar_lea.vmem [#allocation6], %s1957_s21  ;;  %p1963_p11 = scmp.ge.s32.totalorder %s2593_s28, 1 }
  0x2d   : > { %p635_p12 = scmp.lt.s32.totalorder %s2593_s28, 5  ;;  %s3161_s4 = sld [smem:[#allocation21_spill]] }
  0x2e   : > { %s577_s29 = scalar_lea.hbm %s3158_s10, %s2236_s18  ;;  %s609_s10 = sshll.u32 %s601_s17, 4  ;;  %s610_s10 = int_to_ptr.vmem [resolvable:$true] %s609_s10 }
  0x2f   : > { %s578_s2 = sshll.u32 %s577_s29, 4  ;;  %p2776_p13 = pnand %p1963_p11, %p635_p12  ;;  %s579_s2 = int_to_ptr.hbm [resolvable:$true] %s578_s2 }
  0x30   : > { %2319 = dma.hbm_to_vmem [thread:$0]  (!%p2757_p10), %s579_s2, 2048, %s581_s23, %s2766_s16, %s2595_s15, %s2595_s15, %s2596_s14  }
  0x31   : > { %s606_s0 = scalar_lea.hbm %s3159_s12, %s2236_s18  ;;  %s2303_s2 = smul.u32 192, %s2750_s20 }
  0x32   : > { %s607_s19 = sshll.u32 %s606_s0, 4  ;;  %s2304_s14 = smul.u32 192, %s2585_s26  ;;  %s608_s19 = int_to_ptr.hbm [resolvable:$true] %s607_s19 }
  0x33   : > { %s517_s23 = scalar_lea.vmem [#allocation2], %s2303_s2  ;;  %s514_s18 = scalar_lea.sflag [#allocation3], %s2750_s20 }
  0x34   : > { %s522_s13 = scalar_lea.hbm %s3161_s4, %s2304_s14  ;;  %s525_s30 = sshll.u32 %s517_s23, 4  ;;  %s526_s30 = int_to_ptr.vmem [resolvable:$true] %s525_s30 }
  0x35   : > { %s523_s21 = sshll.u32 %s522_s13, 4  ;;  %s2597_s0 = smov 192   ;;  %s524_s21 = int_to_ptr.hbm [resolvable:$true] %s523_s21 }
  0x36   : > { %s2598_s17 = smov 12   ;;  %s2599_s12 = smov 64  }
  0x37   : > { %2316 = dma.hbm_to_vmem [thread:$0]  (!%p2757_p10), %s524_s21, 3072, %s526_s30, %s514_s18, %s2597_s0, %s2597_s0, %s2598_s17  }
  0x38   : > { %s2600_s9 = smov 4   ;;  %639 = sbr.rel (%p2776_p13) target bundleno = 2444 (0x98c), region = 84 }
  0x39   : > { %2322 = dma.hbm_to_vmem [thread:$0]  (!%p2757_p10), %s608_s19, 2048, %s610_s10, %s2766_s16, %s2599_s12, %s2599_s12, %s2600_s9  }
  0x3d   : > { %s2794_s14 = sand.u32 1, %s2569_s22  }
  0x3e   : > { %s2305_s2 = smul.u32 192, %s2794_s14  ;;  %s642_s15 = scalar_lea.sflag [#allocation3], %s2794_s14 }
  0x40   : > { %s2798_s20 = scalar_lea.vmem [#allocation2], %s2305_s2 }
  0x41   : > { %2556 = dma.done.wait (%p2752_p9), %s642_s15, 3072  }
  0x42   : > { %2558 = vsyncadd (%p2752_p9), %s642_s15, 4294964224  ;;  %s3162_s9 = sadd.s32 4294967295, %s2593_s28   ;;  %s1964_s12 = sshll.u32 %s2794_s14, 7 }
  0x43   : > { %s651_s10 = sand.u32 1, %s3162_s9   ;;  %s2807_s27 = scalar_lea.vmem [#allocation4], %s1964_s12 }
  0x44   : > { %s652_s16 = scalar_lea.sflag [#allocation5], %s651_s10  ;;  %3163 = sst [smem:[#allocation17_spill]] %s2807_s27 }
  0x45   : > { %2560 = dma.done.wait (%p2752_p9), %s652_s16, 4096  }
  0x46   : > { %2562 = vsyncadd (%p2752_p9), %s652_s16, 4294963200  ;;  %p762_p0 = scmp.lt.s32.totalorder %s2581_s25, 1  ;;  %p769_p1 = scmp.lt.s32.totalorder %s2577_s24, 1 }
  0x47   : > { %s3164_s21 = sld [smem:[#allocation18_spill]]  ;;  %s2876_s15 = scalar_lea.vmem [#allocation6], %s1964_s12 }
  0x48   : > { %s3203_s25 = smov (!%p762_p0, %s2581_s25), 1  ;;  %s3166_s5 = sld [smem:[#allocation22_spill]] }
  0x49   : > { %s2819_s19 = scalar_select %p769_p1, %s2577_s24, 1 }
  0x4a   : > { %s1966_s3 = sshll.u32 %s3203_s25, 3  ;;  %s3167_s6 = sld [smem:[#allocation23_spill]] }
  0x4b   : > { %s2306_s0 = smul.u32 3, %s2819_s19  ;;  %s2238_s17 = sshll.u32 %s2819_s19, 6 }
  0x4c   : > { %s1969_s14 = sshll.u32 %s2819_s19, 1  ;;  %s3170_s7 = sld [smem:[#allocation30_spill]] }
  0x4d   : > { %s765_s18 = scalar_lea.vmem %s3164_s21, %s1966_s3  ;;  %s3173_s23 = sld [smem:[#allocation32_spill]] }
  0x4e   : > { %s2838_s16 = scalar_lea.vmem %s3166_s5, %s2306_s0  ;;  %s3171_s5 = sld [smem:[#allocation28_spill]] }
  0x4f   : > { %s3174_s21 = sld [smem:[#allocation33_spill]]  ;;  %p1971_p2 = scmp.ne.s32.totalorder %s2577_s24, 0 }
  0x50   : > { %s2843_s29 = scalar_lea.vmem %s3167_s6, %s2238_s17  ;;  %s3172_s17 = sld [smem:[#allocation31_spill]] }
  0x51   : > { %s3175_s24 = sld [smem:[#allocation19_spill]] (!%p1971_p2) }
  0x52   : > { %s793_s9 = scalar_lea.vmem %s3170_s7, %s2819_s19  ;;  %808 = sbr.rel (%p1971_p2) target bundleno = 355 (0x163), region = 100 }
  0x53   : > { %s799_s8 = scalar_lea.vmem %s3173_s23, %s2819_s19 }
  0x54   : > { %s2861_s27 = scalar_lea.vmem %s3171_s5, %s1969_s14 }
  0x55   : > { %s2874_s28 = scalar_lea.vmem %s3174_s21, %s1966_s3 }
  0x56   : > { %s796_s6 = scalar_lea.vmem %s3172_s17, %s2819_s19 }
  0x57   : > { %v809_v0 = vld [vmem:[%s765_s18] sm:$0xff]  ;;  %v2601_v1 = vmov 128.0   ;;  %s3176_s18 = sld [smem:[#allocation20_spill]] }
  0x58   : > { %812 = vadd.xlane.f32.xlu0 %v809_v0  ;;  %2400 = vrcp.f32 %v2601_v1  ;;  %v2398_v21 = vld [vmem:[%s3175_s24] ss:$0 sm:$0xff] }
  0x5d   : > { %v2399_v23 = vld [vmem:[%s3176_s18] ss:$0 sm:$0xff] }
  0x5e   : > { %v2401_v2 = vpop.eup %2400 }
  0x5f   : > { %v815_v3 = vmul.f32 128.0, %v2401_v2  ;;  %vm819_vm0 = vweird.f32 %v2401_v2 }
  0x61   : > { %v816_v4 = vsub.f32 1.0, %v815_v3 }
  0x63   : > { %v817_v5 = vmul.f32 %v2401_v2, %v816_v4 }
  0x65   : > { %v818_v6 = vadd.f32 %v2401_v2, %v817_v5 }
  0x67   : > { %v820_v7 = vsel %vm819_vm0, %v2401_v2, %v818_v6 }
  0xcb   : > { %v813_v8 = vpop.xlane.xlu0 %812 }
  0xcc   : > { %v821_v9 = vmul.f32 %v820_v7, %v813_v8 }
  0xce   : > { %v822_v10 = vsub.f32 %v809_v0, %v821_v9 }
  0xd0   : > { %v823_v11 = vmul.f32 %v822_v10, %v822_v10 }
  0xd2   : > { %824 = vadd.xlane.f32.xlu0 %v823_v11 }
 0x145   : > { %v825_v12 = vpop.xlane.xlu0 %824 }
 0x146   : > { %v826_v13 = vmul.f32 %v825_v12, %v820_v7 }
 0x148   : > { %v827_v14 = vadd.f32 1e-12, %v826_v13 }
 0x14a   : > { %2402 = vrsqrt.f32 %v827_v14  ;;  %vm834_vm2 = vweird.f32 %v827_v14 }
 0x150   : > { %v2403_v15 = vpop.eup %2402 }
 0x151   : > { %v829_v16 = vmul.f32 %v2403_v15, %v827_v14  ;;  %vm835_vm1 = vweird.f32 %v2403_v15 }
 0x152   : > { %vm836_vm3 = vmor %vm834_vm2, %vm835_vm1 }
 0x153   : > { %v830_v17 = vmul.f32 %v2403_v15, %v829_v16 }
 0x155   : > { %v831_v18 = vmul.f32 0.5, %v830_v17 }
 0x157   : > { %v832_v19 = vsub.f32 1.5, %v831_v18 }
 0x159   : > { %v833_v20 = vmul.f32 %v2403_v15, %v832_v19 }
 0x15b   : > { %v837_v22 = vsel %vm836_vm3, %v2403_v15, %v833_v20 }
 0x15c   : > { %v838_v24 = vmul.f32 %v837_v22, %v822_v10 }
 0x15e   : > { %v842_v25 = vmul.f32 %v2398_v21, %v838_v24 }
 0x160   : > { %v846_v26 = vadd.f32 %v2399_v23, %v842_v25 }
 0x162   : > { %847 = vst [vmem:[%s2874_s28] sm:$0xff] %v846_v26 }
 0x163 PF: > { %v2058_v27 = vld [vmem:[%s2798_s20 + $0xa8] sm:$0xf]  ;;  %v2261_v28 = vld [vmem:[%s2798_s20 + $0xb0] sm:$0xf0]  ;;  %v2260_v29 = vld [vmem:[%s2798_s20 + $0xac] sm:$0xf]  ;;  %s3177_s14 = scalar_lea.vmem %s3108_s1, %s3203_s25 }
 0x164   : > { %v2059_v30 = vor.u32 %v2261_v28, %v2058_v27  ;;  %v2060_v31 = vld [vmem:[%s2798_s20 + $0xb4] sm:$0xf0]  ;;  %v2046_v32 = vld [vmem:[%s2798_s20 + $0x90] sm:$0xf]  ;;  %v2258_v33 = vld [vmem:[%s2798_s20 + $0x98] sm:$0xf0] }
 0x165   : > { %v2063_v34 = vor.u32 %v2260_v29, %v2060_v31  ;;  %v2257_v35 = vld [vmem:[%s2798_s20 + $0x94] sm:$0xf]  ;;  %v2048_v36 = vld [vmem:[%s2798_s20 + $0x9c] sm:$0xf0]  ;;  %v2047_v37 = vor.u32 %v2258_v33, %v2046_v32  ;;  %v2034_v39 = vld [vmem:[%s2798_s20 + $0x78] sm:$0xf] }
 0x166   : > { %1018 = vmatpush.bf16.msra.mxu0 %v2059_v30  ;;  %v2051_v38 = vor.u32 %v2257_v35, %v2048_v36  ;;  %v2255_v40 = vld [vmem:[%s2798_s20 + $0x80] sm:$0xf0]  ;;  %v2254_v41 = vld [vmem:[%s2798_s20 + $0x7c] sm:$0xf]  ;;  %v2036_v42 = vld [vmem:[%s2798_s20 + $0x84] sm:$0xf0] }
 0x167   : > { %1031 = vmatpush.bf16.msra.mxu1 %v2063_v34  ;;  %v2035_v43 = vor.u32 %v2255_v40, %v2034_v39  ;;  %v2039_v44 = vor.u32 %v2254_v41, %v2036_v42  ;;  %v2022_v45 = vld [vmem:[%s2798_s20 + $0x60] sm:$0xf]  ;;  %v2252_v46 = vld [vmem:[%s2798_s20 + $0x68] sm:$0xf0]  ;;  %v2251_v47 = vld [vmem:[%s2798_s20 + $0x64] sm:$0xf] }
 0x168   : > { %v2024_v48 = vld [vmem:[%s2798_s20 + $0x6c] sm:$0xf0]  ;;  %v2023_v49 = vor.u32 %v2252_v46, %v2022_v45  ;;  %v2262_v51 = vld [vmem:[%s2798_s20 + $0xb8] sm:$0xf0]  ;;  %v2054_v52 = vld [vmem:[%s2798_s20 + $0x98] sm:$0xf] }
 0x169   : > { %v2066_v50 = vld [vmem:[%s2798_s20 + $0xb0] sm:$0xf]  ;;  %v2027_v53 = vor.u32 %v2251_v47, %v2024_v48  ;;  %v2010_v54 = vld [vmem:[%s2798_s20 + $0x48] sm:$0xf]  ;;  %v2249_v55 = vld [vmem:[%s2798_s20 + $0x50] sm:$0xf0] }
 0x16a   : > { %1019 = vmatpush.bf16.msra.mxu0 %v2047_v37  ;;  %v2067_v56 = vor.u32 %v2262_v51, %v2066_v50  ;;  %v2259_v57 = vld [vmem:[%s2798_s20 + $0xa0] sm:$0xf0]  ;;  %v2248_v58 = vld [vmem:[%s2798_s20 + $0x4c] sm:$0xf]  ;;  %v2012_v59 = vld [vmem:[%s2798_s20 + $0x54] sm:$0xf0]  ;;  %v2011_v61 = vor.u32 %v2249_v55, %v2010_v54 }
 0x16b   : > { %1032 = vmatpush.bf16.msra.mxu1 %v2051_v38  ;;  %v2055_v60 = vor.u32 %v2259_v57, %v2054_v52  ;;  %v1998_v62 = vld [vmem:[%s2798_s20 + $0x30] sm:$0xf]  ;;  %v2042_v63 = vld [vmem:[%s2798_s20 + $0x80] sm:$0xf]  ;;  %v2256_v0 = vld [vmem:[%s2798_s20 + $0x88] sm:$0xf0]  ;;  %v2015_v1 = vor.u32 %v2248_v58, %v2012_v59 }
 0x16c   : > { %1044 = vmatpush.bf16.msra.mxu2 %v2067_v56  ;;  %v2246_v2 = vld [vmem:[%s2798_s20 + $0x38] sm:$0xf0]  ;;  %v2245_v3 = vld [vmem:[%s2798_s20 + $0x34] sm:$0xf]  ;;  %v2000_v4 = vld [vmem:[%s2798_s20 + $0x3c] sm:$0xf0]  ;;  %v2043_v5 = vor.u32 %v2256_v0, %v2042_v63 }
 0x16d   : > { %v1999_v6 = vor.u32 %v2246_v2, %v1998_v62  ;;  %v2030_v7 = vld [vmem:[%s2798_s20 + $0x68] sm:$0xf]  ;;  %v2253_v8 = vld [vmem:[%s2798_s20 + $0x70] sm:$0xf0]  ;;  %v2003_v9 = vor.u32 %v2245_v3, %v2000_v4  ;;  %v1986_v10 = vld [vmem:[%s2798_s20 + $0x18] sm:$0xf] }
 0x16e   : > { %1020 = vmatpush.bf16.msra.mxu0 %v2035_v43  ;;  %v2243_v11 = vld [vmem:[%s2798_s20 + $0x20] sm:$0xf0]  ;;  %v2242_v12 = vld [vmem:[%s2798_s20 + $0x1c] sm:$0xf]  ;;  %v1988_v13 = vld [vmem:[%s2798_s20 + $0x24] sm:$0xf0]  ;;  %v2031_v14 = vor.u32 %v2253_v8, %v2030_v7 }
 0x16f   : > { %1033 = vmatpush.bf16.msra.mxu1 %v2039_v44  ;;  %v1987_v15 = vor.u32 %v2243_v11, %v1986_v10  ;;  %v2018_v16 = vld [vmem:[%s2798_s20 + $0x50] sm:$0xf]  ;;  %v2250_v17 = vld [vmem:[%s2798_s20 + $0x58] sm:$0xf0]  ;;  %v1991_v18 = vor.u32 %v2242_v12, %v1988_v13  ;;  %v1974_v19 = vld [vmem:[%s2798_s20] sm:$0xf] }
 0x170   : > { %1045 = vmatpush.bf16.msra.mxu2 %v2055_v60  ;;  %v2240_v20 = vld [vmem:[%s2798_s20 + $0x8] sm:$0xf0]  ;;  %v2239_v21 = vld [vmem:[%s2798_s20 + $0x4] sm:$0xf]  ;;  %v1976_v22 = vld [vmem:[%s2798_s20 + $0xc] sm:$0xf0]  ;;  %v2019_v23 = vor.u32 %v2250_v17, %v2018_v16 }
 0x171   : > { %v1975_v24 = vor.u32 %v2240_v20, %v1974_v19  ;;  %v2929_v25 = vld [vmem:[%s2874_s28] sm:$0xff]  ;;  %v2006_v26 = vld [vmem:[%s2798_s20 + $0x38] sm:$0xf]  ;;  %v1979_v28 = vor.u32 %v2239_v21, %v1976_v22  ;;  %v2244_v32 = vld [vmem:[%s2798_s20 + $0x28] sm:$0xf0]  ;;  %vm1066_vm4 = vcmask 523264  }
 0x172   : > { %1021 = vmatpush.bf16.msra.mxu0 %v2023_v49  ;;  %v2247_v27 = vld [vmem:[%s2798_s20 + $0x40] sm:$0xf0]  ;;  %v849_v29 = vpack.c.bf16 %v2929_v25, %v2929_v25  ;;  %v1994_v31 = vld [vmem:[%s2798_s20 + $0x20] sm:$0xf]  ;;  %v1982_v34 = vld [vmem:[%s2798_s20 + $0x8] sm:$0xf] }
 0x173   : > { %1034 = vmatpush.bf16.msra.mxu1 %v2027_v53  ;;  %v2007_v30 = vor.u32 %v2247_v27, %v2006_v26  ;;  %v1995_v33 = vor.u32 %v2244_v32, %v1994_v31  ;;  %v2241_v35 = vld [vmem:[%s2798_s20 + $0x10] sm:$0xf0]  ;;  %v882_v37 = vld [vmem:[%s2838_s16] sm:$0x7]  ;;  %s2602_s23 = smov 64   ;;  %vm1102_vm5 = vcmask 1043456  }
 0x174   : > { %1046 = vmatpush.bf16.msra.mxu2 %v2043_v5  ;;  %v1983_v36 = vor.u32 %v2241_v35, %v1982_v34  ;;  %v884_v38 = vperm.slane %v882_v37, 0  ;;  %v885_v39 = vperm.slane %v882_v37, 1  ;;  %v886_v54 = vperm.slane %v882_v37, 2  ;;  %v2404_v60 = vld [vmem:[%s3177_s14] ss:$0 sm:$0xff]  ;;  %v2266_v8 = vld [vmem:[%s2843_s29 + $0x18] sm:$0xff] }
 0x175   : > { %vm1086_vm6 = vcmask 64512   ;;  %v2264_v11 = vld [vmem:[%s2843_s29 + $0x8] sm:$0xff]  ;;  %v2270_v34 = vld [vmem:[%s2843_s29 + $0x38] sm:$0xff]  ;;  %v2269_v35 = vld [vmem:[%s2843_s29 + $0x30] sm:$0xff]  ;;  %s3178_s25 = sld [smem:[#allocation17_spill]] }
 0x176   : > { %1022 = vmatpush.bf16.msra.mxu0 %v2011_v61  ;;  %v2267_v37 = vld [vmem:[%s2843_s29 + $0x20] sm:$0xff]  ;;  %s3181_s17 = sld [smem:[#allocation25_spill]] }
 0x177   : > { %1035 = vmatpush.bf16.msra.mxu1 %v2015_v1  ;;  %s3183_s22 = sld [smem:[#allocation26_spill]] }
 0x178   : > { %1047 = vmatpush.bf16.msra.mxu2 %v2031_v14 }
 0x17a   : > { %1023 = vmatpush.bf16.msra.mxu0 %v1999_v6 }
 0x17b   : > { %1036 = vmatpush.bf16.msra.mxu1 %v2003_v9  ;;  %v2265_v9 = vld [vmem:[%s2843_s29 + $0x10] sm:$0xff] }
 0x17c   : > { %1048 = vmatpush.bf16.msra.mxu2 %v2019_v23  ;;  %s3182_s13 = scalar_lea.vmem %s3181_s17, %s2819_s19 }
 0x17d   : > { %s3184_s21 = scalar_lea.vmem %s3183_s22, %s2819_s19 }
 0x17e   : > { %1024 = vmatpush.bf16.msra.mxu0 %v1987_v15 }
 0x17f   : > { %1037 = vmatpush.bf16.msra.mxu1 %v1991_v18  ;;  %v2263_v18 = vld [vmem:[%s2843_s29] sm:$0xff] }
 0x180   : > { %1049 = vmatpush.bf16.msra.mxu2 %v2007_v30 }
 0x182   : > { %1025 = vmatpush.bf16.msra.mxu0 %v1975_v24 }
 0x183   : > { %1038 = vmatpush.bf16.msra.mxu1 %v1979_v28 }
 0x184   : > { %1050 = vmatpush.bf16.msra.mxu2 %v1995_v33 }
 0x185   : > { %1026 = vmatmul.bf16.vlgmr.msra.gmra.mxu0 %v849_v29 }
 0x186   : > { %1039 = vmatmul.bf16.vlgmr.msra.gmra.mxu1 %v849_v29 }
 0x187   : > { %1229 = vmatpush.bf16.msrb.mxu1 %v2270_v34  ;;  %v2116_v34 = vld [vmem:[%s3178_s25 + $0x10] sm:$0xf] }
 0x188   : > { %1051 = vmatpush.bf16.msra.mxu2 %v1983_v36  ;;  %v2268_v36 = vld [vmem:[%s2843_s29 + $0x28] sm:$0xff]  ;;  %s3179_s29 = sld [smem:[#allocation24_spill]] }
 0x18b   : > { %1052 = vmatmul.bf16.vlgmr.msra.gmra.mxu2 %v849_v29  ;;  %1230 = vmatpush.bf16.msrb.mxu1 %v2269_v35  ;;  %v2274_v35 = vld [vmem:[%s3178_s25 + $0x14] sm:$0xf0] }
 0x18c   : > { %1269 = vmatpush.bf16.msrb.mxu2 %v2266_v8 }
 0x18e   : > { %s3180_s10 = scalar_lea.vmem %s3179_s29, %s2819_s19 }
 0x18f   : > { %1231 = vmatpush.bf16.msrb.mxu1 %v2268_v36  ;;  %v2273_v36 = vld [vmem:[%s3178_s25 + $0x14] sm:$0xf] }
 0x190   : > { %1270 = vmatpush.bf16.msrb.mxu2 %v2265_v9  ;;  %v2148_v9 = vld [vmem:[%s3178_s25 + $0x50] sm:$0xf] }
 0x193   : > { %1232 = vmatpush.bf16.msrb.mxu1 %v2267_v37  ;;  %v2117_v37 = vor.u32 %v2274_v35, %v2116_v34  ;;  %v2295_v35 = vld [vmem:[%s2876_s15 + $0x40] sm:$0xff] }
 0x194   : > { %1271 = vmatpush.bf16.msrb.mxu2 %v2264_v11  ;;  %v2281_v11 = vld [vmem:[%s3178_s25 + $0x54] sm:$0xf] }
 0x198   : > { %1272 = vmatpush.bf16.msrb.mxu2 %v2263_v18 }
 0x202   : > { %v1027_v40 = vpop.f32.mrf.mxu0 }
 0x203   : > { %v1028_v41 = vadd.f32 %v1027_v40, %v884_v38  ;;  %v1040_v42 = vpop.f32.mrf.mxu1 }
 0x204   : > { %v1041_v43 = vadd.f32 %v1040_v42, %v885_v39 }
 0x206   : > { %v1057_v44 = vpack.c.bf16 %v1041_v43, %v1028_v41 }
 0x208   : > { %v1064_v45 = vunpack.c.h.b16 %v1057_v44  ;;  %v1128_v50 = vunpack.c.l.b16 %v1057_v44 }
 0x20a   : > { %v1029_v46 = vpop.f32.mrf.mxu0  ;;  %v1065_v47 = vpack.c.b16 %v1064_v45, %v1064_v45  ;;  %v1129_v51 = vpack.c.b16 %v1128_v50, %v1128_v50  ;;  %v2405_v45 = vld [vmem:[%s3180_s10] ss:$0 sm:$0xff] }
 0x20b   : > { %v1042_v48 = vpop.f32.mrf.mxu1 }
 0x20c   : > { %1132 = vrot.lane.b32.xlu1 %v1065_v47, %s2602_s23  ;;  %v1071_v49 = vsel %vm1066_vm4, %v1065_v47, 0 }
 0x20d   : > { %1080 = vmatpush.bf16.xpose.msra.mxu3 %v1071_v49 }
 0x20e   : > { %v1053_v52 = vpop.f32.mrf.mxu2 }
 0x20f   : > { %v1054_v55 = vadd.f32 %v1053_v52, %v886_v54  ;;  %v2164_v52 = vld [vmem:[%s3178_s25 + $0x70] sm:$0xf]  ;;  %v2285_v54 = vld [vmem:[%s3178_s25 + $0x74] sm:$0xf] }
 0x211   : > { %v1058_v56 = vpack.c.bf16 %v1054_v55, %v1054_v55 }
 0x213   : > { %v1104_v57 = vsel %vm1102_vm5, %v1058_v56, 0  ;;  %v1166_v6 = vunpack.c.l.b16 %v1058_v56  ;;  %v2166_v56 = vld [vmem:[%s3178_s25 + $0x78] sm:$0xf0] }
 0x214   : > { %1130 = vrot.lane.b32.xlu1 %v1129_v51, %s2602_s23  ;;  %2068 = vmatmul.msk.bf16.vlgmr.msra.gmra.mxu3 %vm1066_vm4, %v1057_v44  ;;  %v2603_v51 = vmov 128.0  }
 0x215   : > { %1113 = vmatpush.bf16.msrb.mxu3 %v1104_v57  ;;  %v1167_v7 = vpack.c.b16 %v1166_v6, %v1166_v6  ;;  %v2169_v57 = vor.u32 %v2285_v54, %v2166_v56 }
 0x216   : > { %v1055_v53 = vpop.f32.mrf.mxu2 }
 0x217   : > { %v2286_v53 = vld [vmem:[%s3178_s25 + $0x74] sm:$0xf0] }
 0x218   : > { %v2165_v55 = vor.u32 %v2286_v53, %v2164_v52 }
 0x27e   : > { %v1133_v58 = vpop.permute.xlu1 %1132 }
 0x27f   : > { %v1138_v59 = vsel %vm1066_vm4, %v1133_v58, 0 }
 0x280   : > { %1147 = vmatpush.bf16.xpose.msra.mxu3 %v1138_v59 }
 0x286   : > { %v1131_v17 = vpop.permute.xlu1 %1130 }
 0x297   : > { %v1082_v61 = vpop.f32.mrf.mxu3 }
 0x298   : > { %v1083_v62 = vadd.f32 %v2404_v60, %v1082_v61 }
 0x29a   : > { %v1087_v63 = vsel %vm1086_vm6, %v1083_v62, -inf }
 0x29b   : > { %1088 = vmax.xlane.f32.xlu0 %v1087_v63 }
 0x29f   : > { %v1084_v0 = vpop.f32.mrf.mxu3 }
 0x30e   : > { %v1089_v1 = vpop.xlane.xlu0 %1088 }
 0x30f   : > { %v1090_v2 = vsub.f32 %v1083_v62, %v1089_v1 }
 0x311   : > { %v1091_v3 = vmul.f32 1.442695, %v1090_v2 }
 0x313   : > { %2411 = vpow2.f32 %v1091_v3  ;;  %v2156_v3 = vld [vmem:[%s3178_s25 + $0x60] sm:$0xf] }
 0x319   : > { %v2412_v4 = vpop.eup %2411 }
 0x31a   : > { %v1093_v5 = vsel %vm1086_vm6, %v2412_v4, 0.0 }
 0x31b   : > { %1094 = vadd.xlane.f32.xlu0 %v1093_v5  ;;  %v2283_v5 = vld [vmem:[%s3178_s25 + $0x64] sm:$0xf] }
 0x32f   : > { %1168 = vrot.lane.b32.xlu0 %v1167_v7, %s2602_s23  ;;  %v2158_v7 = vld [vmem:[%s3178_s25 + $0x68] sm:$0xf0] }
 0x330   : > { %v2161_v8 = vor.u32 %v2283_v5, %v2158_v7  ;;  %v2300_v7 = vld [vmem:[%s2876_s15 + $0x68] sm:$0xff] }
 0x38e   : > { %v1095_v10 = vpop.xlane.xlu0 %1094 }
 0x38f   : > { %2413 = vrcp.f32 %v1095_v10  ;;  %v2282_v10 = vld [vmem:[%s3178_s25 + $0x54] sm:$0xf0] }
 0x395   : > { %v2414_v12 = vpop.eup %2413 }
 0x396   : > { %v1097_v13 = vmul.f32 %v2414_v12, %v2412_v4  ;;  %v2284_v4 = vld [vmem:[%s3178_s25 + $0x64] sm:$0xf0]  ;;  %v2149_v12 = vor.u32 %v2282_v10, %v2148_v9  ;;  %v2293_v9 = vld [vmem:[%s2876_s15 + $0x30] sm:$0xff] }
 0x397   : > { %v2157_v6 = vor.u32 %v2284_v4, %v2156_v3  ;;  %v2294_v4 = vld [vmem:[%s2876_s15 + $0x38] sm:$0xff] }
 0x398   : > { %v1098_v14 = vpack.c.bf16 %v1097_v13, %v1097_v13  ;;  %v2150_v13 = vld [vmem:[%s3178_s25 + $0x58] sm:$0xf0]  ;;  %1664 = vmatpush.bf16.msra.mxu1 %v2294_v4 }
 0x39a   : > { %2069 = vmatmul.msk.bf16.vlgmr.msrb.gmra.mxu3 %vm1086_vm6, %v1098_v14  ;;  %v2153_v14 = vor.u32 %v2281_v11, %v2150_v13  ;;  %v2299_v13 = vld [vmem:[%s2876_s15 + $0x60] sm:$0xff] }
 0x39b   : > { %1424 = vmatpush.bf16.msrb.mxu3 %v2165_v55  ;;  %v2406_v55 = vld [vmem:[%s3182_s13] ss:$0 sm:$0xff] }
 0x39c   : > { %1665 = vmatpush.bf16.msra.mxu1 %v2293_v9 }
 0x39f   : > { %1425 = vmatpush.bf16.msrb.mxu3 %v2157_v6 }
 0x3a1   : > { %v1169_v15 = vpop.permute.xlu0 %1168 }
 0x3a2   : > { %v1174_v16 = vsel %vm1102_vm5, %v1169_v15, 0  ;;  %v2140_v15 = vld [vmem:[%s3178_s25 + $0x40] sm:$0xf] }
 0x3a3   : > { %1183 = vmatpush.bf16.msrb.mxu0 %v1174_v16  ;;  %1426 = vmatpush.bf16.msrb.mxu3 %v2149_v12  ;;  %v2280_v16 = vld [vmem:[%s3178_s25 + $0x44] sm:$0xf0] }
 0x3a4   : > { %v2141_v18 = vor.u32 %v2280_v16, %v2140_v15 }
 0x3a7   : > { %1437 = vmatpush.bf16.msra.mxu0 %v2169_v57  ;;  %1427 = vmatpush.bf16.msrb.mxu3 %v2141_v18  ;;  %v2298_v18 = vld [vmem:[%s2876_s15 + $0x58] sm:$0xff] }
 0x3aa   : > { %2070 = vmatmul.msk.bf16.vlgmr.msra.gmra.mxu3 %vm1066_vm4, %v1131_v17  ;;  %v2279_v17 = vld [vmem:[%s3178_s25 + $0x44] sm:$0xf] }
 0x3ab   : > { %1438 = vmatpush.bf16.msra.mxu0 %v2161_v8 }
 0x3af   : > { %1439 = vmatpush.bf16.msra.mxu0 %v2153_v14 }
 0x41d   : > { %v1115_v19 = vpop.f32.mrf.mxu3 }
 0x41e   : > { %v1119_v20 = vpack.c.bf16 %v1115_v19, %v1115_v19  ;;  %v2142_v19 = vld [vmem:[%s3178_s25 + $0x48] sm:$0xf0] }
 0x420   : > { %2105 = vmatmul.msk.bf16.vlgmr.msrb.gmra.mxu2 %vm1066_vm4, %v1119_v20  ;;  %v2145_v20 = vor.u32 %v2279_v17, %v2142_v19  ;;  %v2292_v17 = vld [vmem:[%s2876_s15 + $0x28] sm:$0xff] }
 0x421   : > { %1666 = vmatpush.bf16.msra.mxu1 %v2292_v17 }
 0x422   : > { %1440 = vmatpush.bf16.msra.mxu0 %v2145_v20  ;;  %v2291_v20 = vld [vmem:[%s2876_s15 + $0x20] sm:$0xff] }
 0x425   : > { %v1117_v21 = vpop.f32.mrf.mxu3  ;;  %1667 = vmatpush.bf16.msra.mxu1 %v2291_v20 }
 0x426   : > { %v2132_v21 = vld [vmem:[%s3178_s25 + $0x30] sm:$0xf] }
 0x42d   : > { %v1149_v22 = vpop.f32.mrf.mxu3 }
 0x42e   : > { %v1150_v23 = vadd.f32 %v2404_v60, %v1149_v22  ;;  %v2278_v22 = vld [vmem:[%s3178_s25 + $0x34] sm:$0xf0] }
 0x430   : > { %v1153_v24 = vsel %vm1086_vm6, %v1150_v23, -inf }
 0x431   : > { %1154 = vmax.xlane.f32.xlu2 %v1153_v24  ;;  %v2133_v24 = vor.u32 %v2278_v22, %v2132_v21 }
 0x433   : > { %1428 = vmatpush.bf16.msrb.mxu3 %v2133_v24 }
 0x435   : > { %v1151_v26 = vpop.f32.mrf.mxu3 }
 0x436   : > { %v2134_v26 = vld [vmem:[%s3178_s25 + $0x38] sm:$0xf0] }
 0x4a3   : > { %v1274_v27 = vpop.f32.mrf.mxu2 }
 0x4a4   : > { %v1155_v28 = vpop.xlane.xlu2 %1154 }
 0x4a5   : > { %v1156_v29 = vsub.f32 %v1150_v23, %v1155_v28  ;;  %v2277_v23 = vld [vmem:[%s3178_s25 + $0x34] sm:$0xf]  ;;  %v2124_v28 = vld [vmem:[%s3178_s25 + $0x20] sm:$0xf] }
 0x4a7   : > { %v1157_v30 = vmul.f32 1.442695, %v1156_v29  ;;  %v2276_v29 = vld [vmem:[%s3178_s25 + $0x24] sm:$0xf0] }
 0x4a9   : > { %2415 = vpow2.f32 %v1157_v30  ;;  %v2275_v30 = vld [vmem:[%s3178_s25 + $0x24] sm:$0xf] }
 0x4ab   : > { %v1276_v31 = vpop.f32.mrf.mxu2 }
 0x4ac   : > { %v2125_v31 = vor.u32 %v2276_v29, %v2124_v28  ;;  %v2296_v29 = vld [vmem:[%s2876_s15 + $0x48] sm:$0xff] }
 0x4ae   : > { %1429 = vmatpush.bf16.msrb.mxu3 %v2125_v31 }
 0x4af   : > { %v2416_v32 = vpop.eup %2415 }
 0x4b0   : > { %v1159_v33 = vsel %vm1086_vm6, %v2416_v32, 0.0 }
 0x4b1   : > { %1160 = vadd.xlane.f32.xlu2 %v1159_v33 }
 0x4b2   : > { %1430 = vmatpush.bf16.msrb.mxu3 %v2117_v37 }
 0x524   : > { %v1161_v38 = vpop.xlane.xlu2 %1160 }
 0x525   : > { %2417 = vrcp.f32 %v1161_v38  ;;  %v2118_v38 = vld [vmem:[%s3178_s25 + $0x18] sm:$0xf0] }
 0x526   : > { %2419 = vrcp.f32 %v2603_v51 }
 0x52b   : > { %v2418_v39 = vpop.eup %2417 }
 0x52c   : > { %v1163_v40 = vmul.f32 %v2418_v39, %v2416_v32  ;;  %v2420_v58 = vpop.eup %2419  ;;  %v2126_v32 = vld [vmem:[%s3178_s25 + $0x28] sm:$0xf0]  ;;  %v2121_v39 = vor.u32 %v2273_v36, %v2118_v38 }
 0x52d   : > { %v1289_v59 = vmul.f32 128.0, %v2420_v58  ;;  %vm1293_vm7 = vweird.f32 %v2420_v58  ;;  %v2129_v33 = vor.u32 %v2275_v30, %v2126_v32  ;;  %v2289_v32 = vld [vmem:[%s2876_s15 + $0x10] sm:$0xff] }
 0x52e   : > { %v1164_v41 = vpack.c.bf16 %v1163_v40, %v1163_v40  ;;  %v2108_v40 = vld [vmem:[%s3178_s25] sm:$0xf] }
 0x52f   : > { %v1290_v60 = vsub.f32 1.0, %v1289_v59 }
 0x530   : > { %2071 = vmatmul.msk.bf16.vlgmr.msrb.gmra.mxu0 %vm1086_vm6, %v1164_v41  ;;  %v2272_v41 = vld [vmem:[%s3178_s25 + $0x4] sm:$0xf0] }
 0x5ad   : > { %v1185_v42 = vpop.f32.mrf.mxu0 }
 0x5ae   : > { %v1189_v43 = vpack.c.bf16 %v1185_v42, %v1185_v42  ;;  %v2271_v42 = vld [vmem:[%s3178_s25 + $0x4] sm:$0xf] }
 0x5b0   : > { %2088 = vmatmul.msk.bf16.vlgmr.msrb.gmra.mxu1 %vm1066_vm4, %v1189_v43  ;;  %v2109_v43 = vor.u32 %v2272_v41, %v2108_v40  ;;  %v2288_v40 = vld [vmem:[%s2876_s15 + $0x8] sm:$0xff] }
 0x5b2   : > { %1431 = vmatpush.bf16.msrb.mxu3 %v2109_v43 }
 0x5b5   : > { %v1187_v44 = vpop.f32.mrf.mxu0 }
 0x5b6   : > { %v2110_v44 = vld [vmem:[%s3178_s25 + $0x8] sm:$0xf0] }
 0x62d   : > { %v1234_v46 = vpop.f32.mrf.mxu1 }
 0x62e   : > { %v1275_v47 = vadd.f32 %v1274_v27, %v1234_v46  ;;  %v2137_v27 = vor.u32 %v2277_v23, %v2134_v26  ;;  %v2297_v23 = vld [vmem:[%s2876_s15 + $0x50] sm:$0xff] }
 0x630   : > { %v1282_v48 = vadd.f32 %v2405_v45, %v1275_v47  ;;  %1441 = vmatpush.bf16.msra.mxu0 %v2137_v27  ;;  %v2113_v45 = vor.u32 %v2271_v42, %v2110_v44  ;;  %v2290_v27 = vld [vmem:[%s2876_s15 + $0x18] sm:$0xff] }
 0x631   : > { %1668 = vmatpush.bf16.msra.mxu1 %v2290_v27 }
 0x632   : > { %v1283_v49 = vadd.f32 %v1282_v48, %v2929_v25  ;;  %v1291_v25 = vmul.f32 %v2420_v58, %v1290_v60 }
 0x634   : > { %1286 = vadd.xlane.f32.xlu1 %v1283_v49  ;;  %v1292_v61 = vadd.f32 %v2420_v58, %v1291_v25  ;;  %1442 = vmatpush.bf16.msra.mxu0 %v2129_v33 }
 0x635   : > { %v1236_v50 = vpop.f32.mrf.mxu1  ;;  %1669 = vmatpush.bf16.msra.mxu1 %v2289_v32 }
 0x636   : > { %v2980_v62 = vsel %vm1293_vm7, %v2420_v58, %v1292_v61  ;;  %v2407_v58 = vld [vmem:[%s3184_s21] ss:$0 sm:$0xff] }
 0x637   : > { %v1338_v61 = vld [vmem:[%s2861_s27] sm:$0x3] }
 0x638   : > { %1443 = vmatpush.bf16.msra.mxu0 %v2121_v39  ;;  %v1340_v6 = vperm.slane %v1338_v61, 0 }
 0x639   : > { %1670 = vmatpush.bf16.msra.mxu1 %v2288_v40 }
 0x63c   : > { %1444 = vmatpush.bf16.msra.mxu0 %v2113_v45 }
 0x6a7   : > { %v1287_v63 = vpop.xlane.xlu1 %1286 }
 0x6a8   : > { %v1295_v0 = vmul.f32 %v2980_v62, %v1287_v63  ;;  %v2302_v63 = vld [vmem:[%s2876_s15 + $0x78] sm:$0xff] }
 0x6a9   : > { %1677 = vmatpush.bf16.msra.mxu2 %v2302_v63 }
 0x6aa   : > { %v2983_v1 = vsub.f32 %v1283_v49, %v1295_v0  ;;  %v1341_v0 = vperm.slane %v1338_v61, 1 }
 0x6ac   : > { %v1297_v2 = vmul.f32 %v2983_v1, %v2983_v1 }
 0x6ae   : > { %1298 = vadd.xlane.f32.xlu2 %v1297_v2 }
 0x721   : > { %v1299_v46 = vpop.xlane.xlu2 %1298 }
 0x722   : > { %v1300_v47 = vmul.f32 %v1299_v46, %v2980_v62 }
 0x724   : > { %v1301_v48 = vadd.f32 1e-12, %v1300_v47 }
 0x726   : > { %2421 = vrsqrt.f32 %v1301_v48  ;;  %vm1308_vm9 = vweird.f32 %v1301_v48 }
 0x72c   : > { %v2422_v49 = vpop.eup %2421 }
 0x72d   : > { %v1303_v50 = vmul.f32 %v2422_v49, %v1301_v48  ;;  %vm1309_vm8 = vweird.f32 %v2422_v49 }
 0x72e   : > { %vm1310_vm10 = vmor %vm1308_vm9, %vm1309_vm8 }
 0x72f   : > { %v1304_v51 = vmul.f32 %v2422_v49, %v1303_v50 }
 0x731   : > { %v1305_v52 = vmul.f32 0.5, %v1304_v51 }
 0x733   : > { %v1306_v53 = vsub.f32 1.5, %v1305_v52 }
 0x735   : > { %v1307_v54 = vmul.f32 %v2422_v49, %v1306_v53 }
 0x737   : > { %v1311_v56 = vsel %vm1310_vm10, %v2422_v49, %v1307_v54  ;;  %v2287_v49 = vld [vmem:[%s2876_s15] sm:$0xff] }
 0x738   : > { %v1312_v57 = vmul.f32 %v1311_v56, %v2983_v1  ;;  %v2301_v1 = vld [vmem:[%s2876_s15 + $0x70] sm:$0xff]  ;;  %1671 = vmatpush.bf16.msra.mxu1 %v2287_v49 }
 0x739   : > { %1678 = vmatpush.bf16.msra.mxu2 %v2301_v1 }
 0x73a   : > { %v1316_v59 = vmul.f32 %v2406_v55, %v1312_v57 }
 0x73c   : > { %v3027_v60 = vadd.f32 %v2407_v58, %v1316_v59 }
 0x73d   : > { %1679 = vmatpush.bf16.msra.mxu2 %v2300_v7 }
 0x73e   : > { %v1321_v25 = vpack.c.bf16 %v3027_v60, %v3027_v60 }
 0x740   : > { %1432 = vmatmul.bf16.vlgmr.msrb.gmra.mxu3 %v1321_v25  ;;  %1445 = vmatmul.bf16.vlgmr.msra.gmra.mxu0 %v1321_v25 }
 0x741   : > { %1680 = vmatpush.bf16.msra.mxu2 %v2299_v13 }
 0x745   : > { %1681 = vmatpush.bf16.msra.mxu2 %v2298_v18  ;;  %v2604_v18 = vmov -1.0  }
 0x749   : > { %1682 = vmatpush.bf16.msra.mxu2 %v2297_v23 }
 0x74d   : > { %1683 = vmatpush.bf16.msra.mxu2 %v2296_v29 }
 0x751   : > { %1684 = vmatpush.bf16.msra.mxu2 %v2295_v35 }
 0x7bd   : > { %v1446_v2 = vpop.f32.mrf.mxu0 }
 0x7be   : > { %v3034_v3 = vadd.f32 %v1446_v2, %v1341_v0 }
 0x7c0   : > { %v3038_v5 = vmul.f32 0.70710677, %v3034_v3 }
 0x7c2   : > { %v1459_v8 = vand.u32 2147483647, %v3038_v5  ;;  %vm1455_vm3 = vcmp.ge.f32.partialorder %v3038_v5, 0.0 }
 0x7c3   : > { %v1433_v10 = vpop.f32.mrf.mxu3  ;;  %v1457_v20 = vsel %vm1455_vm3, 1.0, %v2604_v18 }
 0x7c4   : > { %v1461_v11 = vmul.f32 0.3275911, %v1459_v8  ;;  %v3043_v12 = vadd.f32 %v1433_v10, %v1340_v6  ;;  %v1513_v43 = vsub.f32 0.0, %v1459_v8 }
 0x7c5   : > { %v1448_v14 = vpop.f32.mrf.mxu0 }
 0x7c6   : > { %v1463_v15 = vadd.f32 1.0, %v1461_v11  ;;  %v3047_v16 = vmul.f32 0.70710677, %v3043_v12  ;;  %v1515_v51 = vmul.f32 %v1513_v43, %v1459_v8  ;;  %v1450_v32 = vmul.f32 0.5, %v3043_v12 }
 0x7c8   : > { %2423 = vrcp.f32 %v1463_v15  ;;  %v1458_v19 = vand.u32 2147483647, %v3047_v16  ;;  %v1490_v31 = vand.u32 2147483648, %v1463_v15  ;;  %v1488_v34 = vand.u32 2147483647, %v1463_v15 }
 0x7c9   : > { %vm1484_vm12 = vweird.f32 %v1463_v15  ;;  %v1518_v59 = vmul.f32 1.442695, %v1515_v51  ;;  %vm1454_vm4 = vcmp.ge.f32.partialorder %v3047_v16, 0.0 }
 0x7ca   : > { %v1460_v21 = vmul.f32 0.3275911, %v1458_v19  ;;  %v1491_v38 = vor.u32 1.1754944e-38, %v1490_v31  ;;  %vm1489_vm14 = vcmp.eq.f32.partialorder %v1488_v34, 8.507059e+37  ;;  %v1512_v58 = vsub.f32 0.0, %v1458_v19 }
 0x7cb   : > { %v1435_v22 = vpop.f32.mrf.mxu3 }
 0x7cc   : > { %v1462_v24 = vadd.f32 1.0, %v1460_v21  ;;  %v1514_v1 = vmul.f32 %v1512_v58, %v1458_v19 }
 0x7ce   : > { %v2424_v26 = vpop.eup %2423  ;;  %2425 = vrcp.f32 %v1462_v24  ;;  %v1475_v46 = vand.u32 2147483648, %v1462_v24  ;;  %v1473_v48 = vand.u32 2147483647, %v1462_v24  ;;  %vm1469_vm0 = vweird.f32 %v1462_v24 }
 0x7cf   : > { %v1480_v28 = vmul.f32 %v2424_v26, %v1463_v15  ;;  %vm1485_vm11 = vweird.f32 %v2424_v26  ;;  %2427 = vpow2.f32 %v1518_v59  ;;  %v1516_v8 = vmul.f32 1.442695, %v1514_v1 }
 0x7d0   : > { %vm1486_vm13 = vmor %vm1484_vm12, %vm1485_vm11  ;;  %v1476_v54 = vor.u32 1.1754944e-38, %v1475_v46  ;;  %vm1474_vm2 = vcmp.eq.f32.partialorder %v1473_v48, 8.507059e+37 }
 0x7d1   : > { %v1481_v30 = vsub.f32 1.0, %v1480_v28  ;;  %2429 = vpow2.f32 %v1516_v8 }
 0x7d3   : > { %v1482_v33 = vmul.f32 %v2424_v26, %v1481_v30  ;;  %v1456_v30 = vsel %vm1454_vm4, 1.0, %v2604_v18 }
 0x7d4   : > { %v2426_v36 = vpop.eup %2425 }
 0x7d5   : > { %v1483_v37 = vadd.f32 %v2424_v26, %v1482_v33  ;;  %v1465_v39 = vmul.f32 %v2426_v36, %v1462_v24  ;;  %vm1470_vm15 = vweird.f32 %v2426_v36  ;;  %v2428_v11 = vpop.eup %2427  ;;  %v1451_v24 = vmul.f32 0.5, %v3034_v3  ;;  %v2408_v3 = vld [vmem:[%s793_s9] ss:$0 sm:$0xff] }
 0x7d6   : > { %vm1471_vm1 = vmor %vm1469_vm0, %vm1470_vm15 }
 0x7d7   : > { %v1487_v41 = vsel %vm1486_vm13, %v2424_v26, %v1483_v37  ;;  %v1466_v44 = vsub.f32 1.0, %v1465_v39  ;;  %v2430_v23 = vpop.eup %2429 }
 0x7d8   : > { %v1492_v42 = vsel %vm1489_vm14, %v1491_v38, %v1487_v41 }
 0x7d9   : > { %v1495_v45 = vmul.f32 1.0614054, %v1492_v42  ;;  %v1467_v47 = vmul.f32 %v2426_v36, %v1466_v44 }
 0x7db   : > { %v1497_v50 = vadd.f32 -1.4531521, %v1495_v45  ;;  %v1468_v52 = vadd.f32 %v2426_v36, %v1467_v47 }
 0x7dd   : > { %v1499_v53 = vmul.f32 %v1497_v50, %v1492_v42  ;;  %v1472_v55 = vsel %vm1471_vm1, %v2426_v36, %v1468_v52 }
 0x7de   : > { %v1477_v57 = vsel %vm1474_vm2, %v1476_v54, %v1472_v55 }
 0x7df   : > { %v1501_v56 = vadd.f32 1.4214138, %v1499_v53  ;;  %v1494_v25 = vmul.f32 1.0614054, %v1477_v57  ;;  %v2409_v53 = vld [vmem:[%s796_s6] ss:$0 sm:$0xff] }
 0x7e1   : > { %v1503_v61 = vmul.f32 %v1501_v56, %v1492_v42  ;;  %v1496_v63 = vadd.f32 -1.4531521, %v1494_v25 }
 0x7e3   : > { %v1505_v0 = vadd.f32 -0.28449672, %v1503_v61  ;;  %v1498_v2 = vmul.f32 %v1496_v63, %v1477_v57 }
 0x7e5   : > { %v1507_v4 = vmul.f32 %v1505_v0, %v1492_v42  ;;  %v1500_v6 = vadd.f32 1.4214138, %v1498_v2 }
 0x7e7   : > { %v1509_v7 = vadd.f32 0.2548296, %v1507_v4  ;;  %v1502_v9 = vmul.f32 %v1500_v6, %v1477_v57 }
 0x7e9   : > { %v1511_v10 = vmul.f32 %v1509_v7, %v1492_v42  ;;  %v1504_v13 = vadd.f32 -0.28449672, %v1502_v9 }
 0x7eb   : > { %v1521_v14 = vmul.f32 %v2428_v11, %v1511_v10  ;;  %v1506_v15 = vmul.f32 %v1504_v13, %v1477_v57 }
 0x7ed   : > { %v1523_v17 = vsub.f32 1.0, %v1521_v14  ;;  %v1508_v21 = vadd.f32 0.2548296, %v1506_v15 }
 0x7ef   : > { %v1525_v19 = vmul.f32 %v1523_v17, %v1457_v20  ;;  %v1510_v22 = vmul.f32 %v1508_v21, %v1477_v57 }
 0x7f1   : > { %v1527_v26 = vadd.f32 1.0, %v1525_v19  ;;  %v1520_v27 = vmul.f32 %v2430_v23, %v1510_v22 }
 0x7f3   : > { %v1529_v28 = vmul.f32 %v1527_v26, %v1451_v24  ;;  %v1522_v29 = vsub.f32 1.0, %v1520_v27 }
 0x7f5   : > { %v1531_v5 = vpack.c.bf16 %v1529_v28, %v1529_v28  ;;  %v1524_v31 = vmul.f32 %v1522_v29, %v1456_v30 }
 0x7f7   : > { %1685 = vmatmul.bf16.vlgmr.msra.gmra.mxu2 %v1531_v5  ;;  %v1526_v33 = vadd.f32 1.0, %v1524_v31 }
 0x7f9   : > { %v1528_v34 = vmul.f32 %v1526_v33, %v1450_v32 }
 0x7fb   : > { %v1530_v35 = vpack.c.bf16 %v1528_v34, %v1528_v34 }
 0x7fd   : > { %1672 = vmatmul.bf16.vlgmr.msra.gmra.mxu1 %v1530_v35 }
 0x87a   : > { %v1686_v36 = vpop.f32.mrf.mxu2  ;;  %v1673_v16 = vpop.f32.mrf.mxu1 }
 0x87b   : > { %v1674_v37 = vadd.f32 %v2408_v3, %v1673_v16 }
 0x87d   : > { %v1687_v38 = vadd.f32 %v1686_v36, %v1674_v37 }
 0x87f   : > { %v1690_v39 = vadd.f32 %v1687_v38, %v3027_v60 }
 0x881   : > { %1693 = vadd.xlane.f32.xlu2 %v1690_v39 }
 0x882   : > { %v1688_v40 = vpop.f32.mrf.mxu2  ;;  %v1675_v41 = vpop.f32.mrf.mxu1 }
 0x8f4   : > { %v1694_v42 = vpop.xlane.xlu2 %1693 }
 0x8f5   : > { %v1695_v12 = vmul.f32 %v1694_v42, %v2980_v62 }
 0x8f7   : > { %v1696_v43 = vsub.f32 %v1690_v39, %v1695_v12 }
 0x8f9   : > { %v1697_v44 = vmul.f32 %v1696_v43, %v1696_v43 }
 0x8fb   : > { %1698 = vadd.xlane.f32.xlu2 %v1697_v44 }
 0x96e   : > { %v1699_v45 = vpop.xlane.xlu2 %1698 }
 0x96f   : > { %v1700_v46 = vmul.f32 %v1699_v45, %v2980_v62  ;;  %v2410_v62 = vld [vmem:[%s799_s8] ss:$0 sm:$0xff] }
 0x971   : > { %v1701_v47 = vadd.f32 1e-12, %v1700_v46 }
 0x973   : > { %2431 = vrsqrt.f32 %v1701_v47  ;;  %vm1708_vm6 = vweird.f32 %v1701_v47 }
 0x979   : > { %v2432_v48 = vpop.eup %2431 }
 0x97a   : > { %v1703_v49 = vmul.f32 %v2432_v48, %v1701_v47  ;;  %vm1709_vm5 = vweird.f32 %v2432_v48 }
 0x97b   : > { %vm1710_vm7 = vmor %vm1708_vm6, %vm1709_vm5 }
 0x97c   : > { %v1704_v60 = vmul.f32 %v2432_v48, %v1703_v49 }
 0x97e   : > { %v1705_v50 = vmul.f32 0.5, %v1704_v60 }
 0x980   : > { %v1706_v51 = vsub.f32 1.5, %v1705_v50 }
 0x982   : > { %v1707_v52 = vmul.f32 %v2432_v48, %v1706_v51 }
 0x984   : > { %v1711_v54 = vsel %vm1710_vm7, %v2432_v48, %v1707_v52 }
 0x985   : > { %v1712_v55 = vmul.f32 %v1711_v54, %v1696_v43 }
 0x987   : > { %v1716_v56 = vmul.f32 %v2409_v53, %v1712_v55 }
 0x989   : > { %v1720_v57 = vadd.f32 %v2410_v62, %v1716_v56 }
 0x98b   : > { %1721 = vst [vmem:[%s2874_s28] sm:$0xff] %v1720_v57 }
 0x98c PF: > { %s3188_s23 = sld [smem:[#allocation13_spill]] }
 0x98d   : > { %s3189_s21 = sld [smem:[#allocation9_spill]] }
 0x98e   : > { %s3190_s22 = sld [smem:[#allocation10_spill]] }
 0x98f   : > { %s3192_s24 = sld [smem:[#allocation11_spill]] }
 0x990   : > { %s3193_s25 = sld [smem:[#allocation12_spill]] }
 0x991   : > { %s3194_s26 = sld [smem:[#allocation14_spill]] }
 0x992   : > { %s32_s28 = sadd.s32 1, %s3188_s23   ;;  %s3191_s23 = sld [smem:[#allocation16_spill]] }
 0x993   : > { %p29_p3 = scmp.ge.s32.totalorder %s32_s28, 6   ;;  %s3195_s27 = sld [smem:[#allocation15_spill]] }
 0x995   :  { %31 = sbr.rel (!%p29_p3) target bundleno = 24 (0x18), region = 185 }
 0x99a   :  { %1741 = vsyncpa [#allocation3], 1 }
 0x99b   :  { %1743 = vsyncpa [#allocation3 + $0x1], 1 }
 0x99c   :  { %1744 = vsyncpa [#allocation5], 1 }
 0x99d   :  { %1746 = vsyncpa [#allocation5 + $0x1], 1 }

</bundles_post_ra>
